<compile_context>
chip_gen: v7x
topology: tpu7x:2x2x1
jax: 0.10.0
libtpu: 0.0.40
codegen_flags: <defaults>
</compile_context>

<pallas_src>
import functools
from dataclasses import dataclass

import jax
import jax.numpy as jnp
from jax.experimental import pallas as pl
from jax.experimental.pallas import tpu as pltpu


@dataclass
class GPTConfig:
    num_embeddings: int = 50
    embed_dim: int = 32
    seqlen: int = 8
    attention_heads: int = 4
    attn_hidden_dim: int = 32
    ffn_hidden_dim: int = 64
    layers: int = 2
    dropout: float = 0.0
    attn_dropout: float = 0.0
    activation_dropout: float = 0.0


# --------------------------------------------------------------------------
# Single fused Pallas kernel: whole GPT forward
# --------------------------------------------------------------------------

def _gpt_kernel(ids_ref, pids_ref, wte_ref, wpe_ref,
                ln1g_ref, ln1b_ref, wqkv_ref, bqkv_ref, wo_ref, bo_ref,
                ln2g_ref, ln2b_ref, w1_ref, b1_ref, w2_ref, b2_ref,
                lnfg_ref, lnfb_ref,
                loss_ref,
                *, num_layers, num_heads, batch, seqlen, eps):
    B, S, H = batch, seqlen, num_heads
    BS = B * S
    V = wte_ref.shape[0]
    Ah = wo_ref.shape[1]
    Dh = Ah // H
    scale = 1.0 / float(Dh) ** 0.5

    # ---- embeddings: in-kernel one-hot matmul gathers (MXU) ----
    tok_oh = (ids_ref[...] ==
              jax.lax.broadcasted_iota(jnp.int32, (BS, V), 1)).astype(jnp.float32)
    pos_oh = (pids_ref[...] ==
              jax.lax.broadcasted_iota(jnp.int32, (BS, S), 1)).astype(jnp.float32)
    x = jnp.dot(tok_oh, wte_ref[...], preferred_element_type=jnp.float32)
    x = x + jnp.dot(pos_oh, wpe_ref[...], preferred_element_type=jnp.float32)
    # embed_dropout: identity (eval mode)

    def layer_norm(t, g, b):
        mu = jnp.mean(t, axis=-1, keepdims=True)
        tc = t - mu
        var = jnp.mean(tc * tc, axis=-1, keepdims=True)
        return tc * jax.lax.rsqrt(var + eps) * g + b

    # Causal additive bias, built once and reused for all layers / heads.
    # Kept finite and in f32 (no -inf / bf16 overflow hazard).
    row = jax.lax.broadcasted_iota(jnp.int32, (S, S), 0)
    col = jax.lax.broadcasted_iota(jnp.int32, (S, S), 1)
    neg_bias = jnp.where(col <= row, 0.0, -1e30).astype(jnp.float32)      # (S, S)

    for l in range(num_layers):                  # static unroll over layers
        # ---- causal self-attention block (pre-LN) ----
        h = layer_norm(x, ln1g_ref[l], ln1b_ref[l])                       # (BS, E)
        qkv = jnp.dot(h, wqkv_ref[l],
                      preferred_element_type=jnp.float32) + bqkv_ref[l]   # (BS, 3*Ah)
        q = qkv[:, 0 * Ah:1 * Ah]
        k = qkv[:, 1 * Ah:2 * Ah]
        v = qkv[:, 2 * Ah:3 * Ah]

        head_outs = []
        for hi in range(H):                      # static unroll (no grid steps)
            sl = slice(hi * Dh, (hi + 1) * Dh)
            qh = q[:, sl].reshape(B, S, Dh)
            kh = k[:, sl].reshape(B, S, Dh)
            vh = v[:, sl].reshape(B, S, Dh)
            s = jnp.einsum('bqd,bkd->bqk', qh, kh,
                           preferred_element_type=jnp.float32) * scale    # (B, S, S)
            s = s + neg_bias
            m = jnp.max(s, axis=-1, keepdims=True)
            p = jnp.exp(s - m)
            p = p * pl.reciprocal(jnp.sum(p, axis=-1, keepdims=True), approx=True)
            o = jnp.einsum('bqk,bkd->bqd', p, vh,
                           preferred_element_type=jnp.float32)            # (B, S, Dh)
            head_outs.append(o.reshape(BS, Dh))
        attn = jnp.concatenate(head_outs, axis=-1)                        # (BS, Ah)

        # out-projection + residual
        x = x + jnp.dot(attn, wo_ref[l],
                        preferred_element_type=jnp.float32) + bo_ref[l]

        # ---- feed-forward block (pre-LN) ----
        h = layer_norm(x, ln2g_ref[l], ln2b_ref[l])
        h = jnp.dot(h, w1_ref[l], preferred_element_type=jnp.float32) + b1_ref[l]
        h = jax.nn.gelu(h, approximate=True)     # TODO(synk): exact erf form
        x = x + jnp.dot(h, w2_ref[l],
                        preferred_element_type=jnp.float32) + b2_ref[l]

    # ---- final layernorm + loss = sum(enc) ----
    x = layer_norm(x, lnfg_ref[...], lnfb_ref[...])
    loss_ref[0, 0] = jnp.sum(x)


def gpt_forward(params, input_ids, position_ids, cfg: GPTConfig):
    B, S = input_ids.shape
    ids = input_ids.reshape(B * S, 1).astype(jnp.int32)
    pids = position_ids.reshape(B * S, 1).astype(jnp.int32)
    kernel = functools.partial(
        _gpt_kernel,
        num_layers=cfg.layers, num_heads=cfg.attention_heads,
        batch=B, seqlen=S, eps=1e-5)
    loss = pl.pallas_call(
        kernel,
        out_shape=jax.ShapeDtypeStruct((1, 1), jnp.float32),
        out_specs=pl.BlockSpec(memory_space=pltpu.MemorySpace.SMEM),
    )(ids, pids,
      params["wte"], params["wpe"],
      params["ln1_g"], params["ln1_b"], params["wqkv"], params["bqkv"],
      params["wo"], params["bo"], params["ln2_g"], params["ln2_b"],
      params["w1"], params["b1"], params["w2"], params["b2"],
      params["ln_f_g"], params["ln_f_b"])
    return loss[0, 0]


# --------------------------------------------------------------------------
# Parameter init (per-layer weights stacked on a leading layer axis)
# --------------------------------------------------------------------------

def init_params(key, cfg: GPTConfig):
    E, Ah, F, L = cfg.embed_dim, cfg.attn_hidden_dim, cfg.ffn_hidden_dim, cfg.layers
    V, S = cfg.num_embeddings, cfg.seqlen

    def nxt():
        nonlocal key
        key, sub = jax.random.split(key)
        return sub

    def dense(shape):
        return (0.02 * jax.random.normal(nxt(), shape)).astype(jnp.float32)

    params = {
        "wte": dense((V, E)),
        "wpe": dense((S, E)),
        # Per-layer params stacked: indexed in-kernel with ref[l].
        "ln1_g": jnp.ones((L, 1, E), jnp.float32),
        "ln1_b": jnp.zeros((L, 1, E), jnp.float32),
        "wqkv": dense((L, E, 3 * Ah)),          # fused [Wq | Wk | Wv]
        "bqkv": jnp.zeros((L, 1, 3 * Ah), jnp.float32),
        "wo": dense((L, Ah, E)),
        "bo": jnp.zeros((L, 1, E), jnp.float32),
        "ln2_g": jnp.ones((L, 1, E), jnp.float32),
        "ln2_b": jnp.zeros((L, 1, E), jnp.float32),
        "w1": dense((L, E, F)),
        "b1": jnp.zeros((L, 1, F), jnp.float32),
        "w2": dense((L, F, E)),
        "b2": jnp.zeros((L, 1, E), jnp.float32),
        "ln_f_g": jnp.ones((1, E), jnp.float32),
        "ln_f_b": jnp.zeros((1, E), jnp.float32),
    }
    return params


if __name__ == "__main__":
    cfg = GPTConfig()
    key = jax.random.PRNGKey(0)
    pkey, ikey = jax.random.split(key)

    params = init_params(pkey, cfg)

    B, S = 2, cfg.seqlen
    input_ids = jax.random.randint(ikey, (B, S), 0, cfg.num_embeddings, dtype=jnp.int32)
    position_ids = jnp.broadcast_to(jnp.arange(S, dtype=jnp.int32), (B, S))

    loss_fn = jax.jit(functools.partial(gpt_forward, cfg=cfg))
    loss = loss_fn(params, input_ids, position_ids)
    jax.block_until_ready(loss)
    print("KERNEL_OK")
</pallas_src>

<mosaic_0001>
module attributes {stable_mosaic.version = 11 : i64} {
  func.func @_gpt_kernel(%arg0: memref<16x1xi32, #tpu.memory_space<vmem>>, %arg1: memref<16x1xi32, #tpu.memory_space<vmem>>, %arg2: memref<50x32xf32, #tpu.memory_space<vmem>>, %arg3: memref<8x32xf32, #tpu.memory_space<vmem>>, %arg4: memref<2x1x32xf32, #tpu.memory_space<vmem>>, %arg5: memref<2x1x32xf32, #tpu.memory_space<vmem>>, %arg6: memref<2x32x96xf32, #tpu.memory_space<vmem>>, %arg7: memref<2x1x96xf32, #tpu.memory_space<vmem>>, %arg8: memref<2x32x32xf32, #tpu.memory_space<vmem>>, %arg9: memref<2x1x32xf32, #tpu.memory_space<vmem>>, %arg10: memref<2x1x32xf32, #tpu.memory_space<vmem>>, %arg11: memref<2x1x32xf32, #tpu.memory_space<vmem>>, %arg12: memref<2x32x64xf32, #tpu.memory_space<vmem>>, %arg13: memref<2x1x64xf32, #tpu.memory_space<vmem>>, %arg14: memref<2x64x32xf32, #tpu.memory_space<vmem>>, %arg15: memref<2x1x32xf32, #tpu.memory_space<vmem>>, %arg16: memref<1x32xf32, #tpu.memory_space<vmem>>, %arg17: memref<1x32xf32, #tpu.memory_space<vmem>>, %arg18: memref<1x1xf32, #tpu.memory_space<smem>>) attributes {dimension_semantics = [], scalar_prefetch = 0 : i64, scratch_operands = 0 : i64, tpu.core_type = #tpu.core_type<tc>} {
    %c0 = arith.constant 0 : index
    %c0_0 = arith.constant 0 : index
    %0 = vector.load %arg0[%c0, %c0_0] : memref<16x1xi32, #tpu.memory_space<vmem>>, vector<16x1xi32>
    %1 = tpu.iota {dimensions = array<i32: 1>} : vector<16x50xi32>
    %2 = vector.broadcast %0 : vector<16x1xi32> to vector<16x50xi32>
    %3 = arith.cmpi eq, %2, %1 : vector<16x50xi32>
    %4 = arith.extui %3 : vector<16x50xi1> to vector<16x50xi32>
    %5 = arith.sitofp %4 : vector<16x50xi32> to vector<16x50xf32>
    %c0_1 = arith.constant 0 : index
    %c0_2 = arith.constant 0 : index
    %6 = vector.load %arg1[%c0_1, %c0_2] : memref<16x1xi32, #tpu.memory_space<vmem>>, vector<16x1xi32>
    %7 = tpu.iota {dimensions = array<i32: 1>} : vector<16x8xi32>
    %8 = vector.broadcast %6 : vector<16x1xi32> to vector<16x8xi32>
    %9 = arith.cmpi eq, %8, %7 : vector<16x8xi32>
    %10 = arith.extui %9 : vector<16x8xi1> to vector<16x8xi32>
    %11 = arith.sitofp %10 : vector<16x8xi32> to vector<16x8xf32>
    %c0_3 = arith.constant 0 : index
    %c0_4 = arith.constant 0 : index
    %12 = vector.load %arg2[%c0_3, %c0_4] : memref<50x32xf32, #tpu.memory_space<vmem>>, vector<50x32xf32>
    %cst = arith.constant dense<0.000000e+00> : vector<16x32xf32>
    %13 = tpu.matmul %5, %12, %cst {dimension_numbers = #tpu.dot_dimension_numbers<[1], [0], [0], [1], [0, 0, 1, 1], [], []>} : vector<16x50xf32>, vector<50x32xf32>, vector<16x32xf32> -> vector<16x32xf32>
    %c0_5 = arith.constant 0 : index
    %c0_6 = arith.constant 0 : index
    %14 = vector.load %arg3[%c0_5, %c0_6] : memref<8x32xf32, #tpu.memory_space<vmem>>, vector<8x32xf32>
    %cst_7 = arith.constant dense<0.000000e+00> : vector<16x32xf32>
    %15 = tpu.matmul %11, %14, %cst_7 {dimension_numbers = #tpu.dot_dimension_numbers<[1], [0], [0], [1], [0, 0, 1, 1], [], []>} : vector<16x8xf32>, vector<8x32xf32>, vector<16x32xf32> -> vector<16x32xf32>
    %16 = arith.addf %13, %15 : vector<16x32xf32>
    %17 = tpu.iota {dimensions = array<i32: 0>} : vector<8x8xi32>
    %18 = tpu.iota {dimensions = array<i32: 1>} : vector<8x8xi32>
    %19 = arith.cmpi sle, %18, %17 : vector<8x8xi32>
    %cst_8 = arith.constant 0.000000e+00 : f32
    %cst_9 = arith.constant -1.000000e+30 : f32
    %20 = vector.broadcast %cst_8 : f32 to vector<8x8xf32>
    %21 = vector.broadcast %cst_9 : f32 to vector<8x8xf32>
    %22 = arith.select %19, %20, %21 : vector<8x8xi1>, vector<8x8xf32>
    %c0_10 = arith.constant 0 : index
    %c0_11 = arith.constant 0 : index
    %c0_12 = arith.constant 0 : index
    %23 = vector.load %arg4[%c0_10, %c0_11, %c0_12] : memref<2x1x32xf32, #tpu.memory_space<vmem>>, vector<1x1x32xf32>
    %24 = vector.shape_cast %23 : vector<1x1x32xf32> to vector<1x32xf32>
    %c0_13 = arith.constant 0 : index
    %c0_14 = arith.constant 0 : index
    %c0_15 = arith.constant 0 : index
    %25 = vector.load %arg5[%c0_13, %c0_14, %c0_15] : memref<2x1x32xf32, #tpu.memory_space<vmem>>, vector<1x1x32xf32>
    %26 = vector.shape_cast %25 : vector<1x1x32xf32> to vector<1x32xf32>
    %cst_16 = arith.constant dense<0.000000e+00> : vector<16xf32>
    %27 = vector.multi_reduction <add>, %16, %cst_16 [1] : vector<16x32xf32> to vector<16xf32>
    %28 = vector.shape_cast %27 : vector<16xf32> to vector<16x1xf32>
    %cst_17 = arith.constant 3.200000e+01 : f32
    %29 = vector.broadcast %cst_17 : f32 to vector<16x1xf32>
    %30 = arith.divf %28, %29 : vector<16x1xf32>
    %31 = vector.broadcast %30 : vector<16x1xf32> to vector<16x32xf32>
    %32 = arith.subf %16, %31 : vector<16x32xf32>
    %33 = arith.mulf %32, %32 : vector<16x32xf32>
    %cst_18 = arith.constant dense<0.000000e+00> : vector<16xf32>
    %34 = vector.multi_reduction <add>, %33, %cst_18 [1] : vector<16x32xf32> to vector<16xf32>
    %35 = vector.shape_cast %34 : vector<16xf32> to vector<16x1xf32>
    %cst_19 = arith.constant 3.200000e+01 : f32
    %36 = vector.broadcast %cst_19 : f32 to vector<16x1xf32>
    %37 = arith.divf %35, %36 : vector<16x1xf32>
    %cst_20 = arith.constant 9.99999974E-6 : f32
    %38 = vector.broadcast %cst_20 : f32 to vector<16x1xf32>
    %39 = arith.addf %37, %38 : vector<16x1xf32>
    %40 = math.rsqrt %39 : vector<16x1xf32>
    %41 = vector.broadcast %40 : vector<16x1xf32> to vector<16x32xf32>
    %42 = arith.mulf %32, %41 : vector<16x32xf32>
    %43 = vector.broadcast %24 : vector<1x32xf32> to vector<16x32xf32>
    %44 = arith.mulf %42, %43 : vector<16x32xf32>
    %45 = vector.broadcast %26 : vector<1x32xf32> to vector<16x32xf32>
    %46 = arith.addf %44, %45 : vector<16x32xf32>
    %c0_21 = arith.constant 0 : index
    %c0_22 = arith.constant 0 : index
    %c0_23 = arith.constant 0 : index
    %47 = vector.load %arg6[%c0_21, %c0_22, %c0_23] : memref<2x32x96xf32, #tpu.memory_space<vmem>>, vector<1x32x96xf32>
    %48 = vector.shape_cast %47 : vector<1x32x96xf32> to vector<32x96xf32>
    %cst_24 = arith.constant dense<0.000000e+00> : vector<16x96xf32>
    %49 = tpu.matmul %46, %48, %cst_24 {dimension_numbers = #tpu.dot_dimension_numbers<[1], [0], [0], [1], [0, 0, 1, 1], [], []>} : vector<16x32xf32>, vector<32x96xf32>, vector<16x96xf32> -> vector<16x96xf32>
    %c0_25 = arith.constant 0 : index
    %c0_26 = arith.constant 0 : index
    %c0_27 = arith.constant 0 : index
    %50 = vector.load %arg7[%c0_25, %c0_26, %c0_27] : memref<2x1x96xf32, #tpu.memory_space<vmem>>, vector<1x1x96xf32>
    %51 = vector.shape_cast %50 : vector<1x1x96xf32> to vector<1x96xf32>
    %52 = vector.broadcast %51 : vector<1x96xf32> to vector<16x96xf32>
    %53 = arith.addf %49, %52 : vector<16x96xf32>
    %54 = vector.extract_strided_slice %53 {offsets = [0, 0], sizes = [16, 32], strides = [1, 1]} : vector<16x96xf32> to vector<16x32xf32>
    %55 = vector.extract_strided_slice %53 {offsets = [0, 32], sizes = [16, 32], strides = [1, 1]} : vector<16x96xf32> to vector<16x32xf32>
    %56 = vector.extract_strided_slice %53 {offsets = [0, 64], sizes = [16, 32], strides = [1, 1]} : vector<16x96xf32> to vector<16x32xf32>
    %57 = vector.extract_strided_slice %54 {offsets = [0, 0], sizes = [16, 8], strides = [1, 1]} : vector<16x32xf32> to vector<16x8xf32>
    %58 = vector.shape_cast %57 : vector<16x8xf32> to vector<2x8x8xf32>
    %59 = vector.extract_strided_slice %55 {offsets = [0, 0], sizes = [16, 8], strides = [1, 1]} : vector<16x32xf32> to vector<16x8xf32>
    %60 = vector.shape_cast %59 : vector<16x8xf32> to vector<2x8x8xf32>
    %61 = vector.extract_strided_slice %56 {offsets = [0, 0], sizes = [16, 8], strides = [1, 1]} : vector<16x32xf32> to vector<16x8xf32>
    %62 = vector.shape_cast %61 : vector<16x8xf32> to vector<2x8x8xf32>
    "tpu.trace_start"() <{level = 10 : i32, message = "bqd,bkd->bqk"}> : () -> ()
    %cst_28 = arith.constant dense<0.000000e+00> : vector<2x8x8xf32>
    %63 = tpu.matmul %58, %60, %cst_28 {dimension_numbers = #tpu.dot_dimension_numbers<[2], [2], [1], [1], [0, 0, 0, 1, 1, 1], [0], [0]>} : vector<2x8x8xf32>, vector<2x8x8xf32>, vector<2x8x8xf32> -> vector<2x8x8xf32>
    "tpu.trace_stop"() : () -> ()
    %cst_29 = arith.constant 0.353553385 : f32
    %64 = vector.broadcast %cst_29 : f32 to vector<2x8x8xf32>
    %65 = arith.mulf %63, %64 : vector<2x8x8xf32>
    %66 = vector.shape_cast %22 : vector<8x8xf32> to vector<1x8x8xf32>
    %67 = vector.broadcast %66 : vector<1x8x8xf32> to vector<2x8x8xf32>
    %68 = arith.addf %65, %67 : vector<2x8x8xf32>
    %cst_30 = arith.constant dense<0xFF800000> : vector<2x8xf32>
    %69 = vector.multi_reduction <maximumf>, %68, %cst_30 [2] : vector<2x8x8xf32> to vector<2x8xf32>
    %70 = vector.shape_cast %69 : vector<2x8xf32> to vector<2x8x1xf32>
    %71 = vector.broadcast %70 : vector<2x8x1xf32> to vector<2x8x8xf32>
    %72 = arith.subf %68, %71 : vector<2x8x8xf32>
    %73 = math.exp %72 : vector<2x8x8xf32>
    %cst_31 = arith.constant dense<0.000000e+00> : vector<2x8xf32>
    %74 = vector.multi_reduction <add>, %73, %cst_31 [2] : vector<2x8x8xf32> to vector<2x8xf32>
    %75 = vector.shape_cast %74 : vector<2x8xf32> to vector<2x8x1xf32>
    %76 = tpu.reciprocal %75 {approx = true} : vector<2x8x1xf32> -> vector<2x8x1xf32>
    %77 = vector.broadcast %76 : vector<2x8x1xf32> to vector<2x8x8xf32>
    %78 = arith.mulf %73, %77 : vector<2x8x8xf32>
    "tpu.trace_start"() <{level = 10 : i32, message = "bqk,bkd->bqd"}> : () -> ()
    %cst_32 = arith.constant dense<0.000000e+00> : vector<2x8x8xf32>
    %79 = tpu.matmul %78, %62, %cst_32 {dimension_numbers = #tpu.dot_dimension_numbers<[2], [1], [1], [2], [0, 0, 0, 1, 1, 2], [0], [0]>} : vector<2x8x8xf32>, vector<2x8x8xf32>, vector<2x8x8xf32> -> vector<2x8x8xf32>
    "tpu.trace_stop"() : () -> ()
    %80 = vector.shape_cast %79 : vector<2x8x8xf32> to vector<16x8xf32>
    %81 = vector.extract_strided_slice %54 {offsets = [0, 8], sizes = [16, 8], strides = [1, 1]} : vector<16x32xf32> to vector<16x8xf32>
    %82 = vector.shape_cast %81 : vector<16x8xf32> to vector<2x8x8xf32>
    %83 = vector.extract_strided_slice %55 {offsets = [0, 8], sizes = [16, 8], strides = [1, 1]} : vector<16x32xf32> to vector<16x8xf32>
    %84 = vector.shape_cast %83 : vector<16x8xf32> to vector<2x8x8xf32>
    %85 = vector.extract_strided_slice %56 {offsets = [0, 8], sizes = [16, 8], strides = [1, 1]} : vector<16x32xf32> to vector<16x8xf32>
    %86 = vector.shape_cast %85 : vector<16x8xf32> to vector<2x8x8xf32>
    "tpu.trace_start"() <{level = 10 : i32, message = "bqd,bkd->bqk"}> : () -> ()
    %cst_33 = arith.constant dense<0.000000e+00> : vector<2x8x8xf32>
    %87 = tpu.matmul %82, %84, %cst_33 {dimension_numbers = #tpu.dot_dimension_numbers<[2], [2], [1], [1], [0, 0, 0, 1, 1, 1], [0], [0]>} : vector<2x8x8xf32>, vector<2x8x8xf32>, vector<2x8x8xf32> -> vector<2x8x8xf32>
    "tpu.trace_stop"() : () -> ()
    %cst_34 = arith.constant 0.353553385 : f32
    %88 = vector.broadcast %cst_34 : f32 to vector<2x8x8xf32>
    %89 = arith.mulf %87, %88 : vector<2x8x8xf32>
    %90 = vector.shape_cast %22 : vector<8x8xf32> to vector<1x8x8xf32>
    %91 = vector.broadcast %90 : vector<1x8x8xf32> to vector<2x8x8xf32>
    %92 = arith.addf %89, %91 : vector<2x8x8xf32>
    %cst_35 = arith.constant dense<0xFF800000> : vector<2x8xf32>
    %93 = vector.multi_reduction <maximumf>, %92, %cst_35 [2] : vector<2x8x8xf32> to vector<2x8xf32>
    %94 = vector.shape_cast %93 : vector<2x8xf32> to vector<2x8x1xf32>
    %95 = vector.broadcast %94 : vector<2x8x1xf32> to vector<2x8x8xf32>
    %96 = arith.subf %92, %95 : vector<2x8x8xf32>
    %97 = math.exp %96 : vector<2x8x8xf32>
    %cst_36 = arith.constant dense<0.000000e+00> : vector<2x8xf32>
    %98 = vector.multi_reduction <add>, %97, %cst_36 [2] : vector<2x8x8xf32> to vector<2x8xf32>
    %99 = vector.shape_cast %98 : vector<2x8xf32> to vector<2x8x1xf32>
    %100 = tpu.reciprocal %99 {approx = true} : vector<2x8x1xf32> -> vector<2x8x1xf32>
    %101 = vector.broadcast %100 : vector<2x8x1xf32> to vector<2x8x8xf32>
    %102 = arith.mulf %97, %101 : vector<2x8x8xf32>
    "tpu.trace_start"() <{level = 10 : i32, message = "bqk,bkd->bqd"}> : () -> ()
    %cst_37 = arith.constant dense<0.000000e+00> : vector<2x8x8xf32>
    %103 = tpu.matmul %102, %86, %cst_37 {dimension_numbers = #tpu.dot_dimension_numbers<[2], [1], [1], [2], [0, 0, 0, 1, 1, 2], [0], [0]>} : vector<2x8x8xf32>, vector<2x8x8xf32>, vector<2x8x8xf32> -> vector<2x8x8xf32>
    "tpu.trace_stop"() : () -> ()
    %104 = vector.shape_cast %103 : vector<2x8x8xf32> to vector<16x8xf32>
    %105 = vector.extract_strided_slice %54 {offsets = [0, 16], sizes = [16, 8], strides = [1, 1]} : vector<16x32xf32> to vector<16x8xf32>
    %106 = vector.shape_cast %105 : vector<16x8xf32> to vector<2x8x8xf32>
    %107 = vector.extract_strided_slice %55 {offsets = [0, 16], sizes = [16, 8], strides = [1, 1]} : vector<16x32xf32> to vector<16x8xf32>
    %108 = vector.shape_cast %107 : vector<16x8xf32> to vector<2x8x8xf32>
    %109 = vector.extract_strided_slice %56 {offsets = [0, 16], sizes = [16, 8], strides = [1, 1]} : vector<16x32xf32> to vector<16x8xf32>
    %110 = vector.shape_cast %109 : vector<16x8xf32> to vector<2x8x8xf32>
    "tpu.trace_start"() <{level = 10 : i32, message = "bqd,bkd->bqk"}> : () -> ()
    %cst_38 = arith.constant dense<0.000000e+00> : vector<2x8x8xf32>
    %111 = tpu.matmul %106, %108, %cst_38 {dimension_numbers = #tpu.dot_dimension_numbers<[2], [2], [1], [1], [0, 0, 0, 1, 1, 1], [0], [0]>} : vector<2x8x8xf32>, vector<2x8x8xf32>, vector<2x8x8xf32> -> vector<2x8x8xf32>
    "tpu.trace_stop"() : () -> ()
    %cst_39 = arith.constant 0.353553385 : f32
    %112 = vector.broadcast %cst_39 : f32 to vector<2x8x8xf32>
    %113 = arith.mulf %111, %112 : vector<2x8x8xf32>
    %114 = vector.shape_cast %22 : vector<8x8xf32> to vector<1x8x8xf32>
    %115 = vector.broadcast %114 : vector<1x8x8xf32> to vector<2x8x8xf32>
    %116 = arith.addf %113, %115 : vector<2x8x8xf32>
    %cst_40 = arith.constant dense<0xFF800000> : vector<2x8xf32>
    %117 = vector.multi_reduction <maximumf>, %116, %cst_40 [2] : vector<2x8x8xf32> to vector<2x8xf32>
    %118 = vector.shape_cast %117 : vector<2x8xf32> to vector<2x8x1xf32>
    %119 = vector.broadcast %118 : vector<2x8x1xf32> to vector<2x8x8xf32>
    %120 = arith.subf %116, %119 : vector<2x8x8xf32>
    %121 = math.exp %120 : vector<2x8x8xf32>
    %cst_41 = arith.constant dense<0.000000e+00> : vector<2x8xf32>
    %122 = vector.multi_reduction <add>, %121, %cst_41 [2] : vector<2x8x8xf32> to vector<2x8xf32>
    %123 = vector.shape_cast %122 : vector<2x8xf32> to vector<2x8x1xf32>
    %124 = tpu.reciprocal %123 {approx = true} : vector<2x8x1xf32> -> vector<2x8x1xf32>
    %125 = vector.broadcast %124 : vector<2x8x1xf32> to vector<2x8x8xf32>
    %126 = arith.mulf %121, %125 : vector<2x8x8xf32>
    "tpu.trace_start"() <{level = 10 : i32, message = "bqk,bkd->bqd"}> : () -> ()
    %cst_42 = arith.constant dense<0.000000e+00> : vector<2x8x8xf32>
    %127 = tpu.matmul %126, %110, %cst_42 {dimension_numbers = #tpu.dot_dimension_numbers<[2], [1], [1], [2], [0, 0, 0, 1, 1, 2], [0], [0]>} : vector<2x8x8xf32>, vector<2x8x8xf32>, vector<2x8x8xf32> -> vector<2x8x8xf32>
    "tpu.trace_stop"() : () -> ()
    %128 = vector.shape_cast %127 : vector<2x8x8xf32> to vector<16x8xf32>
    %129 = vector.extract_strided_slice %54 {offsets = [0, 24], sizes = [16, 8], strides = [1, 1]} : vector<16x32xf32> to vector<16x8xf32>
    %130 = vector.shape_cast %129 : vector<16x8xf32> to vector<2x8x8xf32>
    %131 = vector.extract_strided_slice %55 {offsets = [0, 24], sizes = [16, 8], strides = [1, 1]} : vector<16x32xf32> to vector<16x8xf32>
    %132 = vector.shape_cast %131 : vector<16x8xf32> to vector<2x8x8xf32>
    %133 = vector.extract_strided_slice %56 {offsets = [0, 24], sizes = [16, 8], strides = [1, 1]} : vector<16x32xf32> to vector<16x8xf32>
    %134 = vector.shape_cast %133 : vector<16x8xf32> to vector<2x8x8xf32>
    "tpu.trace_start"() <{level = 10 : i32, message = "bqd,bkd->bqk"}> : () -> ()
    %cst_43 = arith.constant dense<0.000000e+00> : vector<2x8x8xf32>
    %135 = tpu.matmul %130, %132, %cst_43 {dimension_numbers = #tpu.dot_dimension_numbers<[2], [2], [1], [1], [0, 0, 0, 1, 1, 1], [0], [0]>} : vector<2x8x8xf32>, vector<2x8x8xf32>, vector<2x8x8xf32> -> vector<2x8x8xf32>
    "tpu.trace_stop"() : () -> ()
    %cst_44 = arith.constant 0.353553385 : f32
    %136 = vector.broadcast %cst_44 : f32 to vector<2x8x8xf32>
    %137 = arith.mulf %135, %136 : vector<2x8x8xf32>
    %138 = vector.shape_cast %22 : vector<8x8xf32> to vector<1x8x8xf32>
    %139 = vector.broadcast %138 : vector<1x8x8xf32> to vector<2x8x8xf32>
    %140 = arith.addf %137, %139 : vector<2x8x8xf32>
    %cst_45 = arith.constant dense<0xFF800000> : vector<2x8xf32>
    %141 = vector.multi_reduction <maximumf>, %140, %cst_45 [2] : vector<2x8x8xf32> to vector<2x8xf32>
    %142 = vector.shape_cast %141 : vector<2x8xf32> to vector<2x8x1xf32>
    %143 = vector.broadcast %142 : vector<2x8x1xf32> to vector<2x8x8xf32>
    %144 = arith.subf %140, %143 : vector<2x8x8xf32>
    %145 = math.exp %144 : vector<2x8x8xf32>
    %cst_46 = arith.constant dense<0.000000e+00> : vector<2x8xf32>
    %146 = vector.multi_reduction <add>, %145, %cst_46 [2] : vector<2x8x8xf32> to vector<2x8xf32>
    %147 = vector.shape_cast %146 : vector<2x8xf32> to vector<2x8x1xf32>
    %148 = tpu.reciprocal %147 {approx = true} : vector<2x8x1xf32> -> vector<2x8x1xf32>
    %149 = vector.broadcast %148 : vector<2x8x1xf32> to vector<2x8x8xf32>
    %150 = arith.mulf %145, %149 : vector<2x8x8xf32>
    "tpu.trace_start"() <{level = 10 : i32, message = "bqk,bkd->bqd"}> : () -> ()
    %cst_47 = arith.constant dense<0.000000e+00> : vector<2x8x8xf32>
    %151 = tpu.matmul %150, %134, %cst_47 {dimension_numbers = #tpu.dot_dimension_numbers<[2], [1], [1], [2], [0, 0, 0, 1, 1, 2], [0], [0]>} : vector<2x8x8xf32>, vector<2x8x8xf32>, vector<2x8x8xf32> -> vector<2x8x8xf32>
    "tpu.trace_stop"() : () -> ()
    %152 = vector.shape_cast %151 : vector<2x8x8xf32> to vector<16x8xf32>
    %153 = tpu.concatenate %80, %104, %128, %152 in 1 : vector<16x8xf32>, vector<16x8xf32>, vector<16x8xf32>, vector<16x8xf32> -> vector<16x32xf32>
    %c0_48 = arith.constant 0 : index
    %c0_49 = arith.constant 0 : index
    %c0_50 = arith.constant 0 : index
    %154 = vector.load %arg8[%c0_48, %c0_49, %c0_50] : memref<2x32x32xf32, #tpu.memory_space<vmem>>, vector<1x32x32xf32>
    %155 = vector.shape_cast %154 : vector<1x32x32xf32> to vector<32x32xf32>
    %cst_51 = arith.constant dense<0.000000e+00> : vector<16x32xf32>
    %156 = tpu.matmul %153, %155, %cst_51 {dimension_numbers = #tpu.dot_dimension_numbers<[1], [0], [0], [1], [0, 0, 1, 1], [], []>} : vector<16x32xf32>, vector<32x32xf32>, vector<16x32xf32> -> vector<16x32xf32>
    %157 = arith.addf %16, %156 : vector<16x32xf32>
    %c0_52 = arith.constant 0 : index
    %c0_53 = arith.constant 0 : index
    %c0_54 = arith.constant 0 : index
    %158 = vector.load %arg9[%c0_52, %c0_53, %c0_54] : memref<2x1x32xf32, #tpu.memory_space<vmem>>, vector<1x1x32xf32>
    %159 = vector.shape_cast %158 : vector<1x1x32xf32> to vector<1x32xf32>
    %160 = vector.broadcast %159 : vector<1x32xf32> to vector<16x32xf32>
    %161 = arith.addf %157, %160 : vector<16x32xf32>
    %c0_55 = arith.constant 0 : index
    %c0_56 = arith.constant 0 : index
    %c0_57 = arith.constant 0 : index
    %162 = vector.load %arg10[%c0_55, %c0_56, %c0_57] : memref<2x1x32xf32, #tpu.memory_space<vmem>>, vector<1x1x32xf32>
    %163 = vector.shape_cast %162 : vector<1x1x32xf32> to vector<1x32xf32>
    %c0_58 = arith.constant 0 : index
    %c0_59 = arith.constant 0 : index
    %c0_60 = arith.constant 0 : index
    %164 = vector.load %arg11[%c0_58, %c0_59, %c0_60] : memref<2x1x32xf32, #tpu.memory_space<vmem>>, vector<1x1x32xf32>
    %165 = vector.shape_cast %164 : vector<1x1x32xf32> to vector<1x32xf32>
    %cst_61 = arith.constant dense<0.000000e+00> : vector<16xf32>
    %166 = vector.multi_reduction <add>, %161, %cst_61 [1] : vector<16x32xf32> to vector<16xf32>
    %167 = vector.shape_cast %166 : vector<16xf32> to vector<16x1xf32>
    %cst_62 = arith.constant 3.200000e+01 : f32
    %168 = vector.broadcast %cst_62 : f32 to vector<16x1xf32>
    %169 = arith.divf %167, %168 : vector<16x1xf32>
    %170 = vector.broadcast %169 : vector<16x1xf32> to vector<16x32xf32>
    %171 = arith.subf %161, %170 : vector<16x32xf32>
    %172 = arith.mulf %171, %171 : vector<16x32xf32>
    %cst_63 = arith.constant dense<0.000000e+00> : vector<16xf32>
    %173 = vector.multi_reduction <add>, %172, %cst_63 [1] : vector<16x32xf32> to vector<16xf32>
    %174 = vector.shape_cast %173 : vector<16xf32> to vector<16x1xf32>
    %cst_64 = arith.constant 3.200000e+01 : f32
    %175 = vector.broadcast %cst_64 : f32 to vector<16x1xf32>
    %176 = arith.divf %174, %175 : vector<16x1xf32>
    %cst_65 = arith.constant 9.99999974E-6 : f32
    %177 = vector.broadcast %cst_65 : f32 to vector<16x1xf32>
    %178 = arith.addf %176, %177 : vector<16x1xf32>
    %179 = math.rsqrt %178 : vector<16x1xf32>
    %180 = vector.broadcast %179 : vector<16x1xf32> to vector<16x32xf32>
    %181 = arith.mulf %171, %180 : vector<16x32xf32>
    %182 = vector.broadcast %163 : vector<1x32xf32> to vector<16x32xf32>
    %183 = arith.mulf %181, %182 : vector<16x32xf32>
    %184 = vector.broadcast %165 : vector<1x32xf32> to vector<16x32xf32>
    %185 = arith.addf %183, %184 : vector<16x32xf32>
    %c0_66 = arith.constant 0 : index
    %c0_67 = arith.constant 0 : index
    %c0_68 = arith.constant 0 : index
    %186 = vector.load %arg12[%c0_66, %c0_67, %c0_68] : memref<2x32x64xf32, #tpu.memory_space<vmem>>, vector<1x32x64xf32>
    %187 = vector.shape_cast %186 : vector<1x32x64xf32> to vector<32x64xf32>
    %cst_69 = arith.constant dense<0.000000e+00> : vector<16x64xf32>
    %188 = tpu.matmul %185, %187, %cst_69 {dimension_numbers = #tpu.dot_dimension_numbers<[1], [0], [0], [1], [0, 0, 1, 1], [], []>} : vector<16x32xf32>, vector<32x64xf32>, vector<16x64xf32> -> vector<16x64xf32>
    %c0_70 = arith.constant 0 : index
    %c0_71 = arith.constant 0 : index
    %c0_72 = arith.constant 0 : index
    %189 = vector.load %arg13[%c0_70, %c0_71, %c0_72] : memref<2x1x64xf32, #tpu.memory_space<vmem>>, vector<1x1x64xf32>
    %190 = vector.shape_cast %189 : vector<1x1x64xf32> to vector<1x64xf32>
    %191 = vector.broadcast %190 : vector<1x64xf32> to vector<16x64xf32>
    %192 = arith.addf %188, %191 : vector<16x64xf32>
    %193 = arith.mulf %192, %192 : vector<16x64xf32>
    %194 = arith.mulf %192, %193 : vector<16x64xf32>
    %cst_73 = arith.constant 4.471500e-02 : f32
    %195 = vector.broadcast %cst_73 : f32 to vector<16x64xf32>
    %196 = arith.mulf %195, %194 : vector<16x64xf32>
    %197 = arith.addf %192, %196 : vector<16x64xf32>
    %cst_74 = arith.constant 0.797884583 : f32
    %198 = vector.broadcast %cst_74 : f32 to vector<16x64xf32>
    %199 = arith.mulf %198, %197 : vector<16x64xf32>
    %200 = math.tanh %199 : vector<16x64xf32>
    %cst_75 = arith.constant 1.000000e+00 : f32
    %201 = vector.broadcast %cst_75 : f32 to vector<16x64xf32>
    %202 = arith.addf %201, %200 : vector<16x64xf32>
    %cst_76 = arith.constant 5.000000e-01 : f32
    %203 = vector.broadcast %cst_76 : f32 to vector<16x64xf32>
    %204 = arith.mulf %203, %202 : vector<16x64xf32>
    %205 = arith.mulf %192, %204 : vector<16x64xf32>
    %c0_77 = arith.constant 0 : index
    %c0_78 = arith.constant 0 : index
    %c0_79 = arith.constant 0 : index
    %206 = vector.load %arg14[%c0_77, %c0_78, %c0_79] : memref<2x64x32xf32, #tpu.memory_space<vmem>>, vector<1x64x32xf32>
    %207 = vector.shape_cast %206 : vector<1x64x32xf32> to vector<64x32xf32>
    %cst_80 = arith.constant dense<0.000000e+00> : vector<16x32xf32>
    %208 = tpu.matmul %205, %207, %cst_80 {dimension_numbers = #tpu.dot_dimension_numbers<[1], [0], [0], [1], [0, 0, 1, 1], [], []>} : vector<16x64xf32>, vector<64x32xf32>, vector<16x32xf32> -> vector<16x32xf32>
    %209 = arith.addf %161, %208 : vector<16x32xf32>
    %c0_81 = arith.constant 0 : index
    %c0_82 = arith.constant 0 : index
    %c0_83 = arith.constant 0 : index
    %210 = vector.load %arg15[%c0_81, %c0_82, %c0_83] : memref<2x1x32xf32, #tpu.memory_space<vmem>>, vector<1x1x32xf32>
    %211 = vector.shape_cast %210 : vector<1x1x32xf32> to vector<1x32xf32>
    %212 = vector.broadcast %211 : vector<1x32xf32> to vector<16x32xf32>
    %213 = arith.addf %209, %212 : vector<16x32xf32>
    %c1 = arith.constant 1 : index
    %c0_84 = arith.constant 0 : index
    %c0_85 = arith.constant 0 : index
    %214 = vector.load %arg4[%c1, %c0_84, %c0_85] : memref<2x1x32xf32, #tpu.memory_space<vmem>>, vector<1x1x32xf32>
    %215 = vector.shape_cast %214 : vector<1x1x32xf32> to vector<1x32xf32>
    %c1_86 = arith.constant 1 : index
    %c0_87 = arith.constant 0 : index
    %c0_88 = arith.constant 0 : index
    %216 = vector.load %arg5[%c1_86, %c0_87, %c0_88] : memref<2x1x32xf32, #tpu.memory_space<vmem>>, vector<1x1x32xf32>
    %217 = vector.shape_cast %216 : vector<1x1x32xf32> to vector<1x32xf32>
    %cst_89 = arith.constant dense<0.000000e+00> : vector<16xf32>
    %218 = vector.multi_reduction <add>, %213, %cst_89 [1] : vector<16x32xf32> to vector<16xf32>
    %219 = vector.shape_cast %218 : vector<16xf32> to vector<16x1xf32>
    %cst_90 = arith.constant 3.200000e+01 : f32
    %220 = vector.broadcast %cst_90 : f32 to vector<16x1xf32>
    %221 = arith.divf %219, %220 : vector<16x1xf32>
    %222 = vector.broadcast %221 : vector<16x1xf32> to vector<16x32xf32>
    %223 = arith.subf %213, %222 : vector<16x32xf32>
    %224 = arith.mulf %223, %223 : vector<16x32xf32>
    %cst_91 = arith.constant dense<0.000000e+00> : vector<16xf32>
    %225 = vector.multi_reduction <add>, %224, %cst_91 [1] : vector<16x32xf32> to vector<16xf32>
    %226 = vector.shape_cast %225 : vector<16xf32> to vector<16x1xf32>
    %cst_92 = arith.constant 3.200000e+01 : f32
    %227 = vector.broadcast %cst_92 : f32 to vector<16x1xf32>
    %228 = arith.divf %226, %227 : vector<16x1xf32>
    %cst_93 = arith.constant 9.99999974E-6 : f32
    %229 = vector.broadcast %cst_93 : f32 to vector<16x1xf32>
    %230 = arith.addf %228, %229 : vector<16x1xf32>
    %231 = math.rsqrt %230 : vector<16x1xf32>
    %232 = vector.broadcast %231 : vector<16x1xf32> to vector<16x32xf32>
    %233 = arith.mulf %223, %232 : vector<16x32xf32>
    %234 = vector.broadcast %215 : vector<1x32xf32> to vector<16x32xf32>
    %235 = arith.mulf %233, %234 : vector<16x32xf32>
    %236 = vector.broadcast %217 : vector<1x32xf32> to vector<16x32xf32>
    %237 = arith.addf %235, %236 : vector<16x32xf32>
    %c1_94 = arith.constant 1 : index
    %c0_95 = arith.constant 0 : index
    %c0_96 = arith.constant 0 : index
    %238 = vector.load %arg6[%c1_94, %c0_95, %c0_96] : memref<2x32x96xf32, #tpu.memory_space<vmem>>, vector<1x32x96xf32>
    %239 = vector.shape_cast %238 : vector<1x32x96xf32> to vector<32x96xf32>
    %cst_97 = arith.constant dense<0.000000e+00> : vector<16x96xf32>
    %240 = tpu.matmul %237, %239, %cst_97 {dimension_numbers = #tpu.dot_dimension_numbers<[1], [0], [0], [1], [0, 0, 1, 1], [], []>} : vector<16x32xf32>, vector<32x96xf32>, vector<16x96xf32> -> vector<16x96xf32>
    %c1_98 = arith.constant 1 : index
    %c0_99 = arith.constant 0 : index
    %c0_100 = arith.constant 0 : index
    %241 = vector.load %arg7[%c1_98, %c0_99, %c0_100] : memref<2x1x96xf32, #tpu.memory_space<vmem>>, vector<1x1x96xf32>
    %242 = vector.shape_cast %241 : vector<1x1x96xf32> to vector<1x96xf32>
    %243 = vector.broadcast %242 : vector<1x96xf32> to vector<16x96xf32>
    %244 = arith.addf %240, %243 : vector<16x96xf32>
    %245 = vector.extract_strided_slice %244 {offsets = [0, 0], sizes = [16, 32], strides = [1, 1]} : vector<16x96xf32> to vector<16x32xf32>
    %246 = vector.extract_strided_slice %244 {offsets = [0, 32], sizes = [16, 32], strides = [1, 1]} : vector<16x96xf32> to vector<16x32xf32>
    %247 = vector.extract_strided_slice %244 {offsets = [0, 64], sizes = [16, 32], strides = [1, 1]} : vector<16x96xf32> to vector<16x32xf32>
    %248 = vector.extract_strided_slice %245 {offsets = [0, 0], sizes = [16, 8], strides = [1, 1]} : vector<16x32xf32> to vector<16x8xf32>
    %249 = vector.shape_cast %248 : vector<16x8xf32> to vector<2x8x8xf32>
    %250 = vector.extract_strided_slice %246 {offsets = [0, 0], sizes = [16, 8], strides = [1, 1]} : vector<16x32xf32> to vector<16x8xf32>
    %251 = vector.shape_cast %250 : vector<16x8xf32> to vector<2x8x8xf32>
    %252 = vector.extract_strided_slice %247 {offsets = [0, 0], sizes = [16, 8], strides = [1, 1]} : vector<16x32xf32> to vector<16x8xf32>
    %253 = vector.shape_cast %252 : vector<16x8xf32> to vector<2x8x8xf32>
    "tpu.trace_start"() <{level = 10 : i32, message = "bqd,bkd->bqk"}> : () -> ()
    %cst_101 = arith.constant dense<0.000000e+00> : vector<2x8x8xf32>
    %254 = tpu.matmul %249, %251, %cst_101 {dimension_numbers = #tpu.dot_dimension_numbers<[2], [2], [1], [1], [0, 0, 0, 1, 1, 1], [0], [0]>} : vector<2x8x8xf32>, vector<2x8x8xf32>, vector<2x8x8xf32> -> vector<2x8x8xf32>
    "tpu.trace_stop"() : () -> ()
    %cst_102 = arith.constant 0.353553385 : f32
    %255 = vector.broadcast %cst_102 : f32 to vector<2x8x8xf32>
    %256 = arith.mulf %254, %255 : vector<2x8x8xf32>
    %257 = vector.shape_cast %22 : vector<8x8xf32> to vector<1x8x8xf32>
    %258 = vector.broadcast %257 : vector<1x8x8xf32> to vector<2x8x8xf32>
    %259 = arith.addf %256, %258 : vector<2x8x8xf32>
    %cst_103 = arith.constant dense<0xFF800000> : vector<2x8xf32>
    %260 = vector.multi_reduction <maximumf>, %259, %cst_103 [2] : vector<2x8x8xf32> to vector<2x8xf32>
    %261 = vector.shape_cast %260 : vector<2x8xf32> to vector<2x8x1xf32>
    %262 = vector.broadcast %261 : vector<2x8x1xf32> to vector<2x8x8xf32>
    %263 = arith.subf %259, %262 : vector<2x8x8xf32>
    %264 = math.exp %263 : vector<2x8x8xf32>
    %cst_104 = arith.constant dense<0.000000e+00> : vector<2x8xf32>
    %265 = vector.multi_reduction <add>, %264, %cst_104 [2] : vector<2x8x8xf32> to vector<2x8xf32>
    %266 = vector.shape_cast %265 : vector<2x8xf32> to vector<2x8x1xf32>
    %267 = tpu.reciprocal %266 {approx = true} : vector<2x8x1xf32> -> vector<2x8x1xf32>
    %268 = vector.broadcast %267 : vector<2x8x1xf32> to vector<2x8x8xf32>
    %269 = arith.mulf %264, %268 : vector<2x8x8xf32>
    "tpu.trace_start"() <{level = 10 : i32, message = "bqk,bkd->bqd"}> : () -> ()
    %cst_105 = arith.constant dense<0.000000e+00> : vector<2x8x8xf32>
    %270 = tpu.matmul %269, %253, %cst_105 {dimension_numbers = #tpu.dot_dimension_numbers<[2], [1], [1], [2], [0, 0, 0, 1, 1, 2], [0], [0]>} : vector<2x8x8xf32>, vector<2x8x8xf32>, vector<2x8x8xf32> -> vector<2x8x8xf32>
    "tpu.trace_stop"() : () -> ()
    %271 = vector.shape_cast %270 : vector<2x8x8xf32> to vector<16x8xf32>
    %272 = vector.extract_strided_slice %245 {offsets = [0, 8], sizes = [16, 8], strides = [1, 1]} : vector<16x32xf32> to vector<16x8xf32>
    %273 = vector.shape_cast %272 : vector<16x8xf32> to vector<2x8x8xf32>
    %274 = vector.extract_strided_slice %246 {offsets = [0, 8], sizes = [16, 8], strides = [1, 1]} : vector<16x32xf32> to vector<16x8xf32>
    %275 = vector.shape_cast %274 : vector<16x8xf32> to vector<2x8x8xf32>
    %276 = vector.extract_strided_slice %247 {offsets = [0, 8], sizes = [16, 8], strides = [1, 1]} : vector<16x32xf32> to vector<16x8xf32>
    %277 = vector.shape_cast %276 : vector<16x8xf32> to vector<2x8x8xf32>
    "tpu.trace_start"() <{level = 10 : i32, message = "bqd,bkd->bqk"}> : () -> ()
    %cst_106 = arith.constant dense<0.000000e+00> : vector<2x8x8xf32>
    %278 = tpu.matmul %273, %275, %cst_106 {dimension_numbers = #tpu.dot_dimension_numbers<[2], [2], [1], [1], [0, 0, 0, 1, 1, 1], [0], [0]>} : vector<2x8x8xf32>, vector<2x8x8xf32>, vector<2x8x8xf32> -> vector<2x8x8xf32>
    "tpu.trace_stop"() : () -> ()
    %cst_107 = arith.constant 0.353553385 : f32
    %279 = vector.broadcast %cst_107 : f32 to vector<2x8x8xf32>
    %280 = arith.mulf %278, %279 : vector<2x8x8xf32>
    %281 = vector.shape_cast %22 : vector<8x8xf32> to vector<1x8x8xf32>
    %282 = vector.broadcast %281 : vector<1x8x8xf32> to vector<2x8x8xf32>
    %283 = arith.addf %280, %282 : vector<2x8x8xf32>
    %cst_108 = arith.constant dense<0xFF800000> : vector<2x8xf32>
    %284 = vector.multi_reduction <maximumf>, %283, %cst_108 [2] : vector<2x8x8xf32> to vector<2x8xf32>
    %285 = vector.shape_cast %284 : vector<2x8xf32> to vector<2x8x1xf32>
    %286 = vector.broadcast %285 : vector<2x8x1xf32> to vector<2x8x8xf32>
    %287 = arith.subf %283, %286 : vector<2x8x8xf32>
    %288 = math.exp %287 : vector<2x8x8xf32>
    %cst_109 = arith.constant dense<0.000000e+00> : vector<2x8xf32>
    %289 = vector.multi_reduction <add>, %288, %cst_109 [2] : vector<2x8x8xf32> to vector<2x8xf32>
    %290 = vector.shape_cast %289 : vector<2x8xf32> to vector<2x8x1xf32>
    %291 = tpu.reciprocal %290 {approx = true} : vector<2x8x1xf32> -> vector<2x8x1xf32>
    %292 = vector.broadcast %291 : vector<2x8x1xf32> to vector<2x8x8xf32>
    %293 = arith.mulf %288, %292 : vector<2x8x8xf32>
    "tpu.trace_start"() <{level = 10 : i32, message = "bqk,bkd->bqd"}> : () -> ()
    %cst_110 = arith.constant dense<0.000000e+00> : vector<2x8x8xf32>
    %294 = tpu.matmul %293, %277, %cst_110 {dimension_numbers = #tpu.dot_dimension_numbers<[2], [1], [1], [2], [0, 0, 0, 1, 1, 2], [0], [0]>} : vector<2x8x8xf32>, vector<2x8x8xf32>, vector<2x8x8xf32> -> vector<2x8x8xf32>
    "tpu.trace_stop"() : () -> ()
    %295 = vector.shape_cast %294 : vector<2x8x8xf32> to vector<16x8xf32>
    %296 = vector.extract_strided_slice %245 {offsets = [0, 16], sizes = [16, 8], strides = [1, 1]} : vector<16x32xf32> to vector<16x8xf32>
    %297 = vector.shape_cast %296 : vector<16x8xf32> to vector<2x8x8xf32>
    %298 = vector.extract_strided_slice %246 {offsets = [0, 16], sizes = [16, 8], strides = [1, 1]} : vector<16x32xf32> to vector<16x8xf32>
    %299 = vector.shape_cast %298 : vector<16x8xf32> to vector<2x8x8xf32>
    %300 = vector.extract_strided_slice %247 {offsets = [0, 16], sizes = [16, 8], strides = [1, 1]} : vector<16x32xf32> to vector<16x8xf32>
    %301 = vector.shape_cast %300 : vector<16x8xf32> to vector<2x8x8xf32>
    "tpu.trace_start"() <{level = 10 : i32, message = "bqd,bkd->bqk"}> : () -> ()
    %cst_111 = arith.constant dense<0.000000e+00> : vector<2x8x8xf32>
    %302 = tpu.matmul %297, %299, %cst_111 {dimension_numbers = #tpu.dot_dimension_numbers<[2], [2], [1], [1], [0, 0, 0, 1, 1, 1], [0], [0]>} : vector<2x8x8xf32>, vector<2x8x8xf32>, vector<2x8x8xf32> -> vector<2x8x8xf32>
    "tpu.trace_stop"() : () -> ()
    %cst_112 = arith.constant 0.353553385 : f32
    %303 = vector.broadcast %cst_112 : f32 to vector<2x8x8xf32>
    %304 = arith.mulf %302, %303 : vector<2x8x8xf32>
    %305 = vector.shape_cast %22 : vector<8x8xf32> to vector<1x8x8xf32>
    %306 = vector.broadcast %305 : vector<1x8x8xf32> to vector<2x8x8xf32>
    %307 = arith.addf %304, %306 : vector<2x8x8xf32>
    %cst_113 = arith.constant dense<0xFF800000> : vector<2x8xf32>
    %308 = vector.multi_reduction <maximumf>, %307, %cst_113 [2] : vector<2x8x8xf32> to vector<2x8xf32>
    %309 = vector.shape_cast %308 : vector<2x8xf32> to vector<2x8x1xf32>
    %310 = vector.broadcast %309 : vector<2x8x1xf32> to vector<2x8x8xf32>
    %311 = arith.subf %307, %310 : vector<2x8x8xf32>
    %312 = math.exp %311 : vector<2x8x8xf32>
    %cst_114 = arith.constant dense<0.000000e+00> : vector<2x8xf32>
    %313 = vector.multi_reduction <add>, %312, %cst_114 [2] : vector<2x8x8xf32> to vector<2x8xf32>
    %314 = vector.shape_cast %313 : vector<2x8xf32> to vector<2x8x1xf32>
    %315 = tpu.reciprocal %314 {approx = true} : vector<2x8x1xf32> -> vector<2x8x1xf32>
    %316 = vector.broadcast %315 : vector<2x8x1xf32> to vector<2x8x8xf32>
    %317 = arith.mulf %312, %316 : vector<2x8x8xf32>
    "tpu.trace_start"() <{level = 10 : i32, message = "bqk,bkd->bqd"}> : () -> ()
    %cst_115 = arith.constant dense<0.000000e+00> : vector<2x8x8xf32>
    %318 = tpu.matmul %317, %301, %cst_115 {dimension_numbers = #tpu.dot_dimension_numbers<[2], [1], [1], [2], [0, 0, 0, 1, 1, 2], [0], [0]>} : vector<2x8x8xf32>, vector<2x8x8xf32>, vector<2x8x8xf32> -> vector<2x8x8xf32>
    "tpu.trace_stop"() : () -> ()
    %319 = vector.shape_cast %318 : vector<2x8x8xf32> to vector<16x8xf32>
    %320 = vector.extract_strided_slice %245 {offsets = [0, 24], sizes = [16, 8], strides = [1, 1]} : vector<16x32xf32> to vector<16x8xf32>
    %321 = vector.shape_cast %320 : vector<16x8xf32> to vector<2x8x8xf32>
    %322 = vector.extract_strided_slice %246 {offsets = [0, 24], sizes = [16, 8], strides = [1, 1]} : vector<16x32xf32> to vector<16x8xf32>
    %323 = vector.shape_cast %322 : vector<16x8xf32> to vector<2x8x8xf32>
    %324 = vector.extract_strided_slice %247 {offsets = [0, 24], sizes = [16, 8], strides = [1, 1]} : vector<16x32xf32> to vector<16x8xf32>
    %325 = vector.shape_cast %324 : vector<16x8xf32> to vector<2x8x8xf32>
    "tpu.trace_start"() <{level = 10 : i32, message = "bqd,bkd->bqk"}> : () -> ()
    %cst_116 = arith.constant dense<0.000000e+00> : vector<2x8x8xf32>
    %326 = tpu.matmul %321, %323, %cst_116 {dimension_numbers = #tpu.dot_dimension_numbers<[2], [2], [1], [1], [0, 0, 0, 1, 1, 1], [0], [0]>} : vector<2x8x8xf32>, vector<2x8x8xf32>, vector<2x8x8xf32> -> vector<2x8x8xf32>
    "tpu.trace_stop"() : () -> ()
    %cst_117 = arith.constant 0.353553385 : f32
    %327 = vector.broadcast %cst_117 : f32 to vector<2x8x8xf32>
    %328 = arith.mulf %326, %327 : vector<2x8x8xf32>
    %329 = vector.shape_cast %22 : vector<8x8xf32> to vector<1x8x8xf32>
    %330 = vector.broadcast %329 : vector<1x8x8xf32> to vector<2x8x8xf32>
    %331 = arith.addf %328, %330 : vector<2x8x8xf32>
    %cst_118 = arith.constant dense<0xFF800000> : vector<2x8xf32>
    %332 = vector.multi_reduction <maximumf>, %331, %cst_118 [2] : vector<2x8x8xf32> to vector<2x8xf32>
    %333 = vector.shape_cast %332 : vector<2x8xf32> to vector<2x8x1xf32>
    %334 = vector.broadcast %333 : vector<2x8x1xf32> to vector<2x8x8xf32>
    %335 = arith.subf %331, %334 : vector<2x8x8xf32>
    %336 = math.exp %335 : vector<2x8x8xf32>
    %cst_119 = arith.constant dense<0.000000e+00> : vector<2x8xf32>
    %337 = vector.multi_reduction <add>, %336, %cst_119 [2] : vector<2x8x8xf32> to vector<2x8xf32>
    %338 = vector.shape_cast %337 : vector<2x8xf32> to vector<2x8x1xf32>
    %339 = tpu.reciprocal %338 {approx = true} : vector<2x8x1xf32> -> vector<2x8x1xf32>
    %340 = vector.broadcast %339 : vector<2x8x1xf32> to vector<2x8x8xf32>
    %341 = arith.mulf %336, %340 : vector<2x8x8xf32>
    "tpu.trace_start"() <{level = 10 : i32, message = "bqk,bkd->bqd"}> : () -> ()
    %cst_120 = arith.constant dense<0.000000e+00> : vector<2x8x8xf32>
    %342 = tpu.matmul %341, %325, %cst_120 {dimension_numbers = #tpu.dot_dimension_numbers<[2], [1], [1], [2], [0, 0, 0, 1, 1, 2], [0], [0]>} : vector<2x8x8xf32>, vector<2x8x8xf32>, vector<2x8x8xf32> -> vector<2x8x8xf32>
    "tpu.trace_stop"() : () -> ()
    %343 = vector.shape_cast %342 : vector<2x8x8xf32> to vector<16x8xf32>
    %344 = tpu.concatenate %271, %295, %319, %343 in 1 : vector<16x8xf32>, vector<16x8xf32>, vector<16x8xf32>, vector<16x8xf32> -> vector<16x32xf32>
    %c1_121 = arith.constant 1 : index
    %c0_122 = arith.constant 0 : index
    %c0_123 = arith.constant 0 : index
    %345 = vector.load %arg8[%c1_121, %c0_122, %c0_123] : memref<2x32x32xf32, #tpu.memory_space<vmem>>, vector<1x32x32xf32>
    %346 = vector.shape_cast %345 : vector<1x32x32xf32> to vector<32x32xf32>
    %cst_124 = arith.constant dense<0.000000e+00> : vector<16x32xf32>
    %347 = tpu.matmul %344, %346, %cst_124 {dimension_numbers = #tpu.dot_dimension_numbers<[1], [0], [0], [1], [0, 0, 1, 1], [], []>} : vector<16x32xf32>, vector<32x32xf32>, vector<16x32xf32> -> vector<16x32xf32>
    %348 = arith.addf %213, %347 : vector<16x32xf32>
    %c1_125 = arith.constant 1 : index
    %c0_126 = arith.constant 0 : index
    %c0_127 = arith.constant 0 : index
    %349 = vector.load %arg9[%c1_125, %c0_126, %c0_127] : memref<2x1x32xf32, #tpu.memory_space<vmem>>, vector<1x1x32xf32>
    %350 = vector.shape_cast %349 : vector<1x1x32xf32> to vector<1x32xf32>
    %351 = vector.broadcast %350 : vector<1x32xf32> to vector<16x32xf32>
    %352 = arith.addf %348, %351 : vector<16x32xf32>
    %c1_128 = arith.constant 1 : index
    %c0_129 = arith.constant 0 : index
    %c0_130 = arith.constant 0 : index
    %353 = vector.load %arg10[%c1_128, %c0_129, %c0_130] : memref<2x1x32xf32, #tpu.memory_space<vmem>>, vector<1x1x32xf32>
    %354 = vector.shape_cast %353 : vector<1x1x32xf32> to vector<1x32xf32>
    %c1_131 = arith.constant 1 : index
    %c0_132 = arith.constant 0 : index
    %c0_133 = arith.constant 0 : index
    %355 = vector.load %arg11[%c1_131, %c0_132, %c0_133] : memref<2x1x32xf32, #tpu.memory_space<vmem>>, vector<1x1x32xf32>
    %356 = vector.shape_cast %355 : vector<1x1x32xf32> to vector<1x32xf32>
    %cst_134 = arith.constant dense<0.000000e+00> : vector<16xf32>
    %357 = vector.multi_reduction <add>, %352, %cst_134 [1] : vector<16x32xf32> to vector<16xf32>
    %358 = vector.shape_cast %357 : vector<16xf32> to vector<16x1xf32>
    %cst_135 = arith.constant 3.200000e+01 : f32
    %359 = vector.broadcast %cst_135 : f32 to vector<16x1xf32>
    %360 = arith.divf %358, %359 : vector<16x1xf32>
    %361 = vector.broadcast %360 : vector<16x1xf32> to vector<16x32xf32>
    %362 = arith.subf %352, %361 : vector<16x32xf32>
    %363 = arith.mulf %362, %362 : vector<16x32xf32>
    %cst_136 = arith.constant dense<0.000000e+00> : vector<16xf32>
    %364 = vector.multi_reduction <add>, %363, %cst_136 [1] : vector<16x32xf32> to vector<16xf32>
    %365 = vector.shape_cast %364 : vector<16xf32> to vector<16x1xf32>
    %cst_137 = arith.constant 3.200000e+01 : f32
    %366 = vector.broadcast %cst_137 : f32 to vector<16x1xf32>
    %367 = arith.divf %365, %366 : vector<16x1xf32>
    %cst_138 = arith.constant 9.99999974E-6 : f32
    %368 = vector.broadcast %cst_138 : f32 to vector<16x1xf32>
    %369 = arith.addf %367, %368 : vector<16x1xf32>
    %370 = math.rsqrt %369 : vector<16x1xf32>
    %371 = vector.broadcast %370 : vector<16x1xf32> to vector<16x32xf32>
    %372 = arith.mulf %362, %371 : vector<16x32xf32>
    %373 = vector.broadcast %354 : vector<1x32xf32> to vector<16x32xf32>
    %374 = arith.mulf %372, %373 : vector<16x32xf32>
    %375 = vector.broadcast %356 : vector<1x32xf32> to vector<16x32xf32>
    %376 = arith.addf %374, %375 : vector<16x32xf32>
    %c1_139 = arith.constant 1 : index
    %c0_140 = arith.constant 0 : index
    %c0_141 = arith.constant 0 : index
    %377 = vector.load %arg12[%c1_139, %c0_140, %c0_141] : memref<2x32x64xf32, #tpu.memory_space<vmem>>, vector<1x32x64xf32>
    %378 = vector.shape_cast %377 : vector<1x32x64xf32> to vector<32x64xf32>
    %cst_142 = arith.constant dense<0.000000e+00> : vector<16x64xf32>
    %379 = tpu.matmul %376, %378, %cst_142 {dimension_numbers = #tpu.dot_dimension_numbers<[1], [0], [0], [1], [0, 0, 1, 1], [], []>} : vector<16x32xf32>, vector<32x64xf32>, vector<16x64xf32> -> vector<16x64xf32>
    %c1_143 = arith.constant 1 : index
    %c0_144 = arith.constant 0 : index
    %c0_145 = arith.constant 0 : index
    %380 = vector.load %arg13[%c1_143, %c0_144, %c0_145] : memref<2x1x64xf32, #tpu.memory_space<vmem>>, vector<1x1x64xf32>
    %381 = vector.shape_cast %380 : vector<1x1x64xf32> to vector<1x64xf32>
    %382 = vector.broadcast %381 : vector<1x64xf32> to vector<16x64xf32>
    %383 = arith.addf %379, %382 : vector<16x64xf32>
    %384 = arith.mulf %383, %383 : vector<16x64xf32>
    %385 = arith.mulf %383, %384 : vector<16x64xf32>
    %cst_146 = arith.constant 4.471500e-02 : f32
    %386 = vector.broadcast %cst_146 : f32 to vector<16x64xf32>
    %387 = arith.mulf %386, %385 : vector<16x64xf32>
    %388 = arith.addf %383, %387 : vector<16x64xf32>
    %cst_147 = arith.constant 0.797884583 : f32
    %389 = vector.broadcast %cst_147 : f32 to vector<16x64xf32>
    %390 = arith.mulf %389, %388 : vector<16x64xf32>
    %391 = math.tanh %390 : vector<16x64xf32>
    %cst_148 = arith.constant 1.000000e+00 : f32
    %392 = vector.broadcast %cst_148 : f32 to vector<16x64xf32>
    %393 = arith.addf %392, %391 : vector<16x64xf32>
    %cst_149 = arith.constant 5.000000e-01 : f32
    %394 = vector.broadcast %cst_149 : f32 to vector<16x64xf32>
    %395 = arith.mulf %394, %393 : vector<16x64xf32>
    %396 = arith.mulf %383, %395 : vector<16x64xf32>
    %c1_150 = arith.constant 1 : index
    %c0_151 = arith.constant 0 : index
    %c0_152 = arith.constant 0 : index
    %397 = vector.load %arg14[%c1_150, %c0_151, %c0_152] : memref<2x64x32xf32, #tpu.memory_space<vmem>>, vector<1x64x32xf32>
    %398 = vector.shape_cast %397 : vector<1x64x32xf32> to vector<64x32xf32>
    %cst_153 = arith.constant dense<0.000000e+00> : vector<16x32xf32>
    %399 = tpu.matmul %396, %398, %cst_153 {dimension_numbers = #tpu.dot_dimension_numbers<[1], [0], [0], [1], [0, 0, 1, 1], [], []>} : vector<16x64xf32>, vector<64x32xf32>, vector<16x32xf32> -> vector<16x32xf32>
    %400 = arith.addf %352, %399 : vector<16x32xf32>
    %c1_154 = arith.constant 1 : index
    %c0_155 = arith.constant 0 : index
    %c0_156 = arith.constant 0 : index
    %401 = vector.load %arg15[%c1_154, %c0_155, %c0_156] : memref<2x1x32xf32, #tpu.memory_space<vmem>>, vector<1x1x32xf32>
    %402 = vector.shape_cast %401 : vector<1x1x32xf32> to vector<1x32xf32>
    %403 = vector.broadcast %402 : vector<1x32xf32> to vector<16x32xf32>
    %404 = arith.addf %400, %403 : vector<16x32xf32>
    %c0_157 = arith.constant 0 : index
    %c0_158 = arith.constant 0 : index
    %405 = vector.load %arg16[%c0_157, %c0_158] : memref<1x32xf32, #tpu.memory_space<vmem>>, vector<1x32xf32>
    %c0_159 = arith.constant 0 : index
    %c0_160 = arith.constant 0 : index
    %406 = vector.load %arg17[%c0_159, %c0_160] : memref<1x32xf32, #tpu.memory_space<vmem>>, vector<1x32xf32>
    %cst_161 = arith.constant dense<0.000000e+00> : vector<16xf32>
    %407 = vector.multi_reduction <add>, %404, %cst_161 [1] : vector<16x32xf32> to vector<16xf32>
    %408 = vector.shape_cast %407 : vector<16xf32> to vector<16x1xf32>
    %cst_162 = arith.constant 3.200000e+01 : f32
    %409 = vector.broadcast %cst_162 : f32 to vector<16x1xf32>
    %410 = arith.divf %408, %409 : vector<16x1xf32>
    %411 = vector.broadcast %410 : vector<16x1xf32> to vector<16x32xf32>
    %412 = arith.subf %404, %411 : vector<16x32xf32>
    %413 = arith.mulf %412, %412 : vector<16x32xf32>
    %cst_163 = arith.constant dense<0.000000e+00> : vector<16xf32>
    %414 = vector.multi_reduction <add>, %413, %cst_163 [1] : vector<16x32xf32> to vector<16xf32>
    %415 = vector.shape_cast %414 : vector<16xf32> to vector<16x1xf32>
    %cst_164 = arith.constant 3.200000e+01 : f32
    %416 = vector.broadcast %cst_164 : f32 to vector<16x1xf32>
    %417 = arith.divf %415, %416 : vector<16x1xf32>
    %cst_165 = arith.constant 9.99999974E-6 : f32
    %418 = vector.broadcast %cst_165 : f32 to vector<16x1xf32>
    %419 = arith.addf %417, %418 : vector<16x1xf32>
    %420 = math.rsqrt %419 : vector<16x1xf32>
    %421 = vector.broadcast %420 : vector<16x1xf32> to vector<16x32xf32>
    %422 = arith.mulf %412, %421 : vector<16x32xf32>
    %423 = vector.broadcast %405 : vector<1x32xf32> to vector<16x32xf32>
    %424 = arith.mulf %422, %423 : vector<16x32xf32>
    %425 = vector.broadcast %406 : vector<1x32xf32> to vector<16x32xf32>
    %426 = arith.addf %424, %425 : vector<16x32xf32>
    %427 = vector.shape_cast %426 : vector<16x32xf32> to vector<1x16x32xf32>
    %cst_166 = arith.constant dense<0.000000e+00> : vector<1xf32>
    %428 = vector.multi_reduction <add>, %427, %cst_166 [1, 2] : vector<1x16x32xf32> to vector<1xf32>
    %429 = vector.shape_cast %428 : vector<1xf32> to vector<1x1x1xf32>
    %430 = vector.extract %429[0, 0, 0] : f32 from vector<1x1x1xf32>
    %c0_167 = arith.constant 0 : index
    %c0_168 = arith.constant 0 : index
    %431 = memref.load %arg18[%c0_167, %c0_168] : memref<1x1xf32, #tpu.memory_space<smem>>
    memref.store %430, %arg18[%c0_167, %c0_168] : memref<1x1xf32, #tpu.memory_space<smem>>
    return
  }
}

</mosaic_0001>

<bundles_post_ra>
// kernel: gpt_forward.1
= control target key start
LH: loop header
LB: loop body
LE: loop exit
PB: predicated region body
PF: predicated region fallthrough
CT: control target
= control target key end

     0   :  { %s5589_s0 = inlined_call_operand.vmem [shape: s32[16,1], index: 0, kind: input, shape index: {}]   ;;  %s5590_s1 = inlined_call_operand.vmem [shape: s32[16,1], index: 1, kind: input, shape index: {}]   ;;  %s5591_s2 = inlined_call_operand.vmem [shape: f32[50,32], index: 2, kind: input, shape index: {}]   ;;  %s5592_s3 = inlined_call_operand.vmem [shape: f32[8,32], index: 3, kind: input, shape index: {}]   ;;  %s5593_s4 = inlined_call_operand.vmem [shape: f32[2,1,32], index: 4, kind: input, shape index: {}]   ;;  %s5594_s5 = inlined_call_operand.vmem [shape: f32[2,1,32], index: 5, kind: input, shape index: {}]   ;;  %s5595_s6 = inlined_call_operand.vmem [shape: f32[2,32,96], index: 6, kind: input, shape index: {}]   ;;  %s5596_s7 = inlined_call_operand.vmem [shape: f32[2,1,96], index: 7, kind: input, shape index: {}]   ;;  %s5597_s8 = inlined_call_operand.vmem [shape: f32[2,32,32], index: 8, kind: input, shape index: {}]   ;;  %s5598_s9 = inlined_call_operand.vmem [shape: f32[2,1,32], index: 9, kind: input, shape index: {}]   ;;  %s5599_s10 = inlined_call_operand.vmem [shape: f32[2,1,32], index: 10, kind: input, shape index: {}]   ;;  %s5600_s11 = inlined_call_operand.vmem [shape: f32[2,1,32], index: 11, kind: input, shape index: {}]   ;;  %s5601_s12 = inlined_call_operand.vmem [shape: f32[2,32,64], index: 12, kind: input, shape index: {}]   ;;  %s5602_s13 = inlined_call_operand.vmem [shape: f32[2,1,64], index: 13, kind: input, shape index: {}]   ;;  %s5603_s14 = inlined_call_operand.vmem [shape: f32[2,64,32], index: 14, kind: input, shape index: {}]   ;;  %s5604_s15 = inlined_call_operand.vmem [shape: f32[2,1,32], index: 15, kind: input, shape index: {}]   ;;  %s5605_s16 = inlined_call_operand.vmem [shape: f32[1,32], index: 16, kind: input, shape index: {}]   ;;  %s5606_s17 = inlined_call_operand.vmem [shape: f32[1,32], index: 17, kind: input, shape index: {}]   ;;  %s5607_s18 = inlined_call_operand.hbm [shape: f32[1,1], index: 18, kind: output, shape index: {}]  }
   0x1   :  { %5624 = sst [smem:[#allocation5_spill]] %s5589_s0 }
   0x2   :  { %5625 = sst [smem:[#allocation6_spill]] %s5590_s1 }
   0x3   :  { %5626 = sst [smem:[#allocation7_spill]] %s5591_s2 }
   0x4   :  { %5627 = sst [smem:[#allocation8_spill]] %s5602_s13 }
   0x5   :  { %s5628_s29 = sld [smem:[#allocation6_spill]]  ;;  %s5629_s13 = sld [smem:[#allocation5_spill]]  ;;  %v4816_v2 = vmov 0  }
   0x6   :  { %4710 = vset.pattern.permute.xlu0 %v4816_v2  ;;  %4711 = vset.pattern.permute.xlu1 %v4816_v2 }
   0xb   :  { %v76_v0 = vld [vmem:[%s5628_s29] sm:$0xff] }
   0xc   :  { %v60_v1 = vld [vmem:[%s5629_s13] sm:$0xff] }
   0xd   :  { %23 = vsyncpa [#allocation3], 0  ;;  %79 = vperm.xlu0 %4710, %v76_v0   ;;  %65 = vperm.xlu1 %4711, %v60_v1   ;;  %v77_v3 = vld [vmem:[%s5628_s29 + $0x8] sm:$0xff]  ;;  %v97_v5 = vld [vmem:[%s5592_s3] sm:$0xff]  ;;  %s5630_s25 = sld [smem:[#allocation7_spill]]  ;;  %v62_v9 = vlaneseq  ;;  %vm98_vm0 = vcmask 64512  }
   0xe   :  { %v61_v4 = vld [vmem:[%s5629_s13 + $0x8] sm:$0xff]  ;;  %4309 = vmatprep.subr.mxu0 %v97_v5  ;;  %v4817_v13 = vmov 0.0   ;;  %vm180_vm4 = vcmask 408576   ;;  %vm187_vm5 = vcmask 1041408   ;;  %vm272_vm7 = vcmask 261120   ;;  %v316_v41 = vld [vmem:[%s5595_s6] sm:$0xff] }
   0xf   :  { %4310 = vmatpush3.msra.mxu0 %v97_v5  ;;  %v4952_v10 = vand.u32 127, %v62_v9  ;;  %v317_v42 = vld [vmem:[%s5595_s6 + $0x8] sm:$0xff]  ;;  %v318_v43 = vld [vmem:[%s5595_s6 + $0x10] sm:$0xff]  ;;  %v319_v45 = vld [vmem:[%s5595_s6 + $0x18] sm:$0xff]  ;;  %vm4818_vm8 = vmmov 0   ;;  %s4819_s1 = smov 96  }
  0x10   :  { %v4607_v44 = vpack.c.bf16 %v317_v42, %v316_v41  ;;  %v4611_v46 = vpack.c.bf16 %v319_v45, %v318_v43  ;;  %v4067_v54 = vld [vmem:[%s5593_s4] ss:$0 sm:$0xff]  ;;  %s4821_s20 = smov 64   ;;  %s4822_s21 = smov 88   ;;  %vm1771_vm10 = vcmask 195584   ;;  %vm1768_vm11 = vcmask 130048  }
  0x11   :  { %82 = vperm.xlu0 %4710, %v77_v3   ;;  %68 = vperm.xlu1 %4711, %v61_v4   ;;  %v4068_v56 = vld [vmem:[%s5594_s5] ss:$0 sm:$0xff]  ;;  %s4823_s22 = smov 120   ;;  %s4824_s2 = smov 56   ;;  %vm2032_vm12 = vcmask 523264  }
  0x12   :  { %4608 = vmatprep.subr.bf16.mxu1 %v4607_v44  ;;  %v4069_v63 = vld [vmem:[%s5596_s7] ss:$0 sm:$0xff]  ;;  %s4825_s23 = smov 80   ;;  %s4826_s24 = smov 112  }
  0x13   :  { %v90_v6 = vld [vmem:[%s5630_s25] sm:$0xff]  ;;  %v91_v7 = vld [vmem:[%s5630_s25 + $0x8] sm:$0xff]  ;;  %v92_v15 = vld [vmem:[%s5630_s25 + $0x10] sm:$0xff]  ;;  %4610 = vmatpush3.bf16.msra.mxu1 %v4607_v44  ;;  %s5622_s26 = smov 72   ;;  %s5618_s27 = smov 104  }
  0x14   :  { %v4595_v8 = vpack.c.bf16 %v91_v7, %v90_v6  ;;  %v93_v16 = vld [vmem:[%s5630_s25 + $0x18] sm:$0xff]  ;;  %v94_v21 = vld [vmem:[%s5630_s25 + $0x20] sm:$0xff]  ;;  %v95_v22 = vld [vmem:[%s5630_s25 + $0x28] sm:$0xff]  ;;  %4612 = vmatprep.subr.bf16.mxu1 %v4611_v46  ;;  %v267_v6 = vshrl.u32 %v62_v9, 7  ;;  %v4820_v7 = vmov -1e+30  }
  0x15   :  { %v4599_v19 = vpack.c.bf16 %v93_v16, %v92_v15  ;;  %v4603_v23 = vpack.c.bf16 %v95_v22, %v94_v21  ;;  %v96_v25 = vld [vmem:[%s5630_s25 + $0x30] sm:$0x3]  ;;  %s4827_s25 = smov 48   ;;  %s5616_s3 = smov 40  }
  0x16   :  { %4596 = vmatprep.subr.bf16.mxu0 %v4595_v8  ;;  %vm268_vm9 = vcmp.le.s32.totalorder %v4952_v10, %v267_v6  ;;  %s5614_s13 = smov 8   ;;  %s5612_s28 = smov 16  }
  0x17   :  { %4614 = vmatpush3.bf16.msra.mxu1 %v4611_v46  ;;  %s5620_s29 = smov 24  }
  0x18   :  { %4342 = vmatprep.subr.mxu1 %v4817_v13 }
  0x8c   :  { %v80_v11 = vpop.permute.xlu0 %79  ;;  %v66_v12 = vpop.permute.xlu1 %65 }
  0x8d   :  { %vm84_vm1 = vcmp.eq.s32.totalorder %v80_v11, %v4952_v10  ;;  %vm70_vm2 = vcmp.eq.s32.totalorder %v66_v12, %v4952_v10 }
  0x8e   :  { %v4060_v14 = vsel %vm84_vm1, 1.0, %v4817_v13  ;;  %v4058_v18 = vsel %vm70_vm2, 1.0, %v4817_v13 }
  0x8f   :  { %4311 = vmatprep.mubr.msk.f32.mxu0 %vm98_vm0, %v4060_v14 }
  0x90   :  { %v83_v17 = vpop.permute.xlu0 %82  ;;  %v69_v24 = vpop.permute.xlu1 %68 }
  0x91   :  { %vm85_vm3 = vcmp.eq.s32.totalorder %v83_v17, %v4952_v10  ;;  %vm71_vm6 = vcmp.eq.s32.totalorder %v69_v24, %v4952_v10 }
  0x92   :  { %v4061_v20 = vsel %vm85_vm3, 1.0, %v4817_v13  ;;  %v4059_v26 = vsel %vm71_vm6, 1.0, %v4817_v13 }
  0x93   :  { %4312 = vmatmul.mubr.msk.f32.vlgmr.msra.gmra.mrb[0].mxu0 %vm98_vm0, %v4061_v20 }
  0x94   :  { %4598 = vmatpush3.bf16.msra.mxu0 %v4595_v8  ;;  %4328 = vmatprep.mubr.msk.f32.mxu0 %vm180_vm4, %v4058_v18  ;;  %v5044_v8 = vsel %vm268_vm9, 0.0, %v4820_v7 }
  0x95   :  { %4600 = vmatprep.subr.bf16.mxu0 %v4599_v19 }
  0x98   :  { %4602 = vmatpush3.bf16.msra.mxu0 %v4599_v19 }
  0x99   :  { %4604 = vmatprep.subr.bf16.mxu0 %v4603_v23 }
  0x9c   :  { %4606 = vmatpush3.bf16.msra.mxu0 %v4603_v23 }
  0x9d   :  { %4326 = vmatprep.subr.msk.mxu0 %vm187_vm5, %v96_v25 }
  0xa0   :  { %4327 = vmatpush3.msk.msra.mxu0 %vm187_vm5, %v96_v25 }
  0xa1   :  { %4329 = vmatmul.mubr.msk.f32.vlgmr.msra.gmra.mrb[0].mxu0 %vm180_vm4, %v4059_v26  ;;  %4352 = vmatprep.subr.mxu0 %v4817_v13 }
  0xa2   :  { %4354 = vmatprep.mubr.msk.f32.mxu0 %vm4818_vm8, %v4817_v13 }
 0x174   :  { %v4982_v27 = vpop.f32.mrb[0].mxu0 }
 0x175   :  { %v4984_v28 = vpop.f32.mrb[1].mxu0  ;;  %v276_v29 = vsel %vm272_vm7, %v4982_v27, 0.0 }
 0x176   :  { %277 = vadd.xlane.f32.xlu1 %v276_v29  ;;  %v273_v30 = vsel %vm272_vm7, %v4984_v28, 0.0 }
 0x177   :  { %274 = vadd.xlane.f32.xlu0 %v273_v30 }
 0x203   :  { %v278_v31 = vpop.xlane.xlu1 %277 }
 0x204   :  { %v281_v32 = vmul.f32 0.03125, %v278_v31  ;;  %v275_v33 = vpop.xlane.xlu0 %274 }
 0x205   :  { %v280_v34 = vmul.f32 0.03125, %v275_v33 }
 0x206   :  { %v283_v35 = vsub.f32 %v4982_v27, %v281_v32 }
 0x207   :  { %v282_v36 = vsub.f32 %v4984_v28, %v280_v34 }
 0x208   :  { %v285_v39 = vmul.f32 %v283_v35, %v283_v35 }
 0x209   :  { %v284_v37 = vmul.f32 %v282_v36, %v282_v36 }
 0x20a   :  { %v289_v40 = vsel %vm272_vm7, %v285_v39, 0.0 }
 0x20b   :  { %v286_v38 = vsel %vm272_vm7, %v284_v37, 0.0 }
 0x20c   :  { %287 = vadd.xlane.f32.xlu0 %v286_v38 }
 0x210   :  { %290 = vadd.xlane.f32.xlu0 %v289_v40 }
 0x299   :  { %v288_v47 = vpop.xlane.xlu0 %287 }
 0x29a   :  { %v292_v48 = vmul.f32 0.03125, %v288_v47 }
 0x29c   :  { %v294_v49 = vadd.f32 1e-05, %v292_v48 }
 0x29d   :  { %v291_v50 = vpop.xlane.xlu0 %290 }
 0x29e   :  { %4712 = vrsqrt.f32 %v294_v49  ;;  %v293_v51 = vmul.f32 0.03125, %v291_v50 }
 0x2a0   :  { %v295_v52 = vadd.f32 1e-05, %v293_v51 }
 0x2a2   :  { %4714 = vrsqrt.f32 %v295_v52 }
 0x2a8   :  { %v4713_v53 = vpop.eup %4712 }
 0x2a9   :  { %v298_v55 = vmul.f32 %v4713_v53, %v282_v36 }
 0x2ab   :  { %v306_v57 = vmul.f32 %v4067_v54, %v298_v55 }
 0x2ac   :  { %v4715_v58 = vpop.eup %4714 }
 0x2ad   :  { %v299_v59 = vmul.f32 %v4715_v58, %v283_v35  ;;  %v314_v60 = vadd.f32 %v4068_v56, %v306_v57 }
 0x2af   :  { %v307_v61 = vmul.f32 %v4067_v54, %v299_v59  ;;  %4339 = vmatprep.mubr.msk.f32.mxu1 %vm272_vm7, %v314_v60 }
 0x2b1   :  { %v315_v62 = vadd.f32 %v4068_v56, %v307_v61 }
 0x2b3   :  { %4340 = vmatmul.mubr.msk.f32.vlgmr.msra.gmra.mrb[0].mxu1 %vm272_vm7, %v315_v62 }
 0x2b4   :  { %4344 = vmatprep.mubr.msk.f32.mxu1 %vm4818_vm8, %v4817_v13 }
 0x386   :  { %v4341_v0 = vpop.f32.mrb[0].mxu1 }
 0x387   :  { %v5022_v1 = vadd.f32 %v4341_v0, %v4069_v63  ;;  %v399_v2 = vpop.f32.mrb[1].mxu1 }
 0x388   :  { %v5024_v3 = vadd.f32 %v4069_v63, %v399_v2 }
 0x389   :  { %486 = vrot.lane.b32.xlu0 %v5022_v1, %s4819_s1 }
 0x38a   :  { %409 = vrot.lane.b32.xlu1 %v5024_v3, %s4819_s1 }
 0x3fb   :  { %v487_v5 = vpop.permute.xlu0 %486 }
 0x3fc   :  { %v410_v4 = vpop.permute.xlu1 %409 }
 0x3fd   :  { %4343 = vmatpush3.xpose.msk.msra.mxu1 %vm98_vm0, %v410_v4 }
 0x3fe   :  { %4347 = vmatprep.subr.mxu1 %v4817_v13 }
 0x400   :  { %4345 = vmatmul.mubr.msk.f32.vlgmr.msra.gmra.mrb[2].mxu1 %vm98_vm0, %v5024_v3 }
 0x401   :  { %4348 = vmatpush3.xpose.msk.msra.mxu1 %vm98_vm0, %v487_v5  ;;  %4349 = vmatprep.mubr.msk.f32.mxu1 %vm4818_vm8, %v4817_v13 }
 0x402   :  { %4357 = vmatprep.subr.mxu1 %v4817_v13 }
 0x404   :  { %4350 = vmatmul.mubr.msk.f32.vlgmr.msra.gmra.mrb[4].mxu1 %vm98_vm0, %v5022_v1 }
 0x405   :  { %4359 = vmatprep.mubr.msk.f32.mxu1 %vm4818_vm8, %v4817_v13 }
 0x4d3   :  { %v481_v11 = vpop.f32.mrb[2].mxu1 }
 0x4d4   :  { %v562_v12 = vmul.f32 0.35355338, %v481_v11  ;;  %v4346_v14 = vpop.f32.mrb[3].mxu1 }
 0x4d6   :  { %v564_v15 = vadd.f32 %v562_v12, %v5044_v8 }
 0x4d7   :  { %v558_v16 = vpop.f32.mrb[4].mxu1 }
 0x4d8   :  { %v563_v17 = vmul.f32 0.35355338, %v558_v16  ;;  %v4351_v18 = vpop.f32.mrb[5].mxu1  ;;  %v566_v19 = vsel %vm98_vm0, %v564_v15, -inf }
 0x4d9   :  { %567 = vmax.xlane.f32.xlu1 %v566_v19 }
 0x4da   :  { %v565_v20 = vadd.f32 %v563_v17, %v5044_v8 }
 0x4dc   :  { %v569_v9 = vsel %vm98_vm0, %v565_v20, -inf }
 0x4dd   :  { %570 = vmax.xlane.f32.xlu0 %v569_v9 }
 0x4ea   :  { %588 = vrot.lane.b32.xlu1 %v5024_v3, %s4821_s20 }
 0x4ee   :  { %742 = vrot.lane.b32.xlu1 %v5024_v3, %s4822_s21 }
 0x4f2   :  { %820 = vrot.lane.b32.xlu1 %v5022_v1, %s4822_s21 }
 0x4f3   :  { %664 = vrot.lane.b32.xlu0 %v5022_v1, %s4821_s20 }
 0x566   :  { %v568_v10 = vpop.xlane.xlu1 %567 }
 0x567   :  { %v572_v21 = vsub.f32 %v564_v15, %v568_v10 }
 0x569   :  { %v574_v22 = vmul.f32 1.442695, %v572_v21 }
 0x56a   :  { %v589_v23 = vpop.permute.xlu1 %588  ;;  %v571_v24 = vpop.xlane.xlu0 %570 }
 0x56b   :  { %4716 = vpow2.f32 %v574_v22  ;;  %v573_v25 = vsub.f32 %v565_v20, %v571_v24  ;;  %4353 = vmatpush3.msra.mxu0 %v589_v23 }
 0x56c   :  { %4362 = vmatprep.subr.mxu0 %v4817_v13 }
 0x56d   :  { %v576_v26 = vmul.f32 1.442695, %v573_v25 }
 0x56e   :  { %v665_v29 = vpop.permute.xlu0 %664  ;;  %v743_v34 = vpop.permute.xlu1 %742 }
 0x56f   :  { %4718 = vpow2.f32 %v576_v26  ;;  %4358 = vmatpush3.msra.mxu1 %v665_v29 }
 0x570   :  { %4367 = vmatprep.subr.mxu1 %v4817_v13 }
 0x572   :  { %v821_v35 = vpop.permute.xlu1 %820 }
 0x575   :  { %v4717_v30 = vpop.eup %4716 }
 0x576   :  { %v578_v31 = vsel %vm98_vm0, %v4717_v30, 0.0 }
 0x577   :  { %579 = vadd.xlane.f32.xlu1 %v578_v31 }
 0x579   :  { %v4719_v32 = vpop.eup %4718 }
 0x57a   :  { %v581_v33 = vsel %vm98_vm0, %v4719_v32, 0.0 }
 0x57b   :  { %582 = vadd.xlane.f32.xlu0 %v581_v33 }
 0x588   :  { %818 = vrot.lane.b32.xlu1 %v5022_v1, %s4823_s22 }
 0x591   :  { %740 = vrot.lane.b32.xlu0 %v5024_v3, %s4823_s22 }
 0x604   :  { %v580_v36 = vpop.xlane.xlu1 %579 }
 0x605   :  { %4720 = vrcp.f32 %v580_v36 }
 0x608   :  { %v583_v37 = vpop.xlane.xlu0 %582  ;;  %v819_v43 = vpop.permute.xlu1 %818 }
 0x609   :  { %4722 = vrcp.f32 %v583_v37 }
 0x60c   :  { %v741_v42 = vpop.permute.xlu0 %740 }
 0x60f   :  { %v4721_v38 = vpop.eup %4720 }
 0x610   :  { %v586_v39 = vmul.f32 %v4721_v38, %v4717_v30 }
 0x612   :  { %4355 = vmatmul.mubr.msk.f32.vlgmr.msra.gmra.mrb[2].mxu0 %vm98_vm0, %v586_v39 }
 0x613   :  { %v4723_v40 = vpop.eup %4722  ;;  %4363 = vmatpush3.xpose.msk.msra.mxu0 %vm98_vm0, %v743_v34  ;;  %4364 = vmatprep.mubr.msk.f32.mxu0 %vm4818_vm8, %v4817_v13 }
 0x614   :  { %v587_v41 = vmul.f32 %v4723_v40, %v4719_v32  ;;  %4372 = vmatprep.subr.mxu0 %v4817_v13 }
 0x616   :  { %4360 = vmatmul.mubr.msk.f32.vlgmr.msra.gmra.mrb[6].mxu1 %vm98_vm0, %v587_v41  ;;  %4365 = vmatmul.mubr.msk.f32.vlgmr.msra.gmra.mrb[4].mxu0 %vm98_vm0, %v741_v42 }
 0x617   :  { %4368 = vmatpush3.xpose.msk.msra.mxu1 %vm98_vm0, %v821_v35  ;;  %4369 = vmatprep.mubr.msk.f32.mxu1 %vm4818_vm8, %v4817_v13 }
 0x618   :  { %4377 = vmatprep.subr.mxu1 %v4817_v13  ;;  %4374 = vmatprep.mubr.msk.f32.mxu0 %vm4818_vm8, %v4817_v13 }
 0x61a   :  { %4370 = vmatmul.mubr.msk.f32.vlgmr.msra.gmra.mrb[8].mxu1 %vm98_vm0, %v819_v43 }
 0x61b   :  { %4379 = vmatprep.mubr.msk.f32.mxu1 %vm4818_vm8, %v4817_v13 }
 0x6e5   :  { %v5082_v44 = vpop.f32.mrb[2].mxu0 }
 0x6e6   :  { %v4356_v45 = vpop.f32.mrb[3].mxu0 }
 0x6e9   :  { %v5084_v46 = vpop.f32.mrb[6].mxu1  ;;  %v814_v47 = vpop.f32.mrb[4].mxu0 }
 0x6ea   :  { %v896_v48 = vmul.f32 0.35355338, %v814_v47  ;;  %v4361_v49 = vpop.f32.mrb[7].mxu1  ;;  %v4366_v50 = vpop.f32.mrb[5].mxu0 }
 0x6ec   :  { %v898_v51 = vadd.f32 %v896_v48, %v5044_v8 }
 0x6ed   :  { %v892_v52 = vpop.f32.mrb[8].mxu1 }
 0x6ee   :  { %v897_v53 = vmul.f32 0.35355338, %v892_v52  ;;  %v4371_v54 = vpop.f32.mrb[9].mxu1  ;;  %v900_v55 = vsel %vm98_vm0, %v898_v51, -inf }
 0x6ef   :  { %901 = vmax.xlane.f32.xlu0 %v900_v55 }
 0x6f0   :  { %v899_v56 = vadd.f32 %v897_v53, %v5044_v8 }
 0x6f2   :  { %v903_v57 = vsel %vm98_vm0, %v899_v56, -inf }
 0x6f3   :  { %904 = vmax.xlane.f32.xlu1 %v903_v57 }
 0x704   :  { %922 = vrot.lane.b32.xlu1 %v5024_v3, %s4824_s2 }
 0x705   :  { %998 = vrot.lane.b32.xlu0 %v5022_v1, %s4824_s2 }
 0x708   :  { %1076 = vrot.lane.b32.xlu1 %v5024_v3, %s4825_s23 }
 0x70c   :  { %1154 = vrot.lane.b32.xlu1 %v5022_v1, %s4825_s23 }
 0x710   :  { %1152 = vrot.lane.b32.xlu1 %v5022_v1, %s4826_s24 }
 0x77c   :  { %v902_v58 = vpop.xlane.xlu0 %901 }
 0x77d   :  { %v906_v59 = vsub.f32 %v898_v51, %v902_v58 }
 0x77f   :  { %v908_v60 = vmul.f32 1.442695, %v906_v59 }
 0x780   :  { %v999_v61 = vpop.permute.xlu0 %998  ;;  %v905_v62 = vpop.xlane.xlu1 %904 }
 0x781   :  { %4724 = vpow2.f32 %v908_v60  ;;  %v907_v63 = vsub.f32 %v899_v56, %v905_v62  ;;  %4378 = vmatpush3.msra.mxu1 %v999_v61 }
 0x782   :  { %4387 = vmatprep.subr.mxu1 %v4817_v13 }
 0x783   :  { %v910_v0 = vmul.f32 1.442695, %v907_v63 }
 0x784   :  { %v923_v2 = vpop.permute.xlu1 %922 }
 0x785   :  { %4726 = vpow2.f32 %v910_v0  ;;  %4373 = vmatpush3.msra.mxu0 %v923_v2 }
 0x786   :  { %4382 = vmatprep.subr.mxu0 %v4817_v13 }
 0x788   :  { %v1077_v14 = vpop.permute.xlu1 %1076 }
 0x78b   :  { %v4725_v4 = vpop.eup %4724 }
 0x78c   :  { %v912_v5 = vsel %vm98_vm0, %v4725_v4, 0.0  ;;  %v1155_v18 = vpop.permute.xlu1 %1154 }
 0x78d   :  { %913 = vadd.xlane.f32.xlu0 %v912_v5 }
 0x78f   :  { %v4727_v6 = vpop.eup %4726 }
 0x790   :  { %v915_v7 = vsel %vm98_vm0, %v4727_v6, 0.0  ;;  %v1153_v9 = vpop.permute.xlu1 %1152 }
 0x791   :  { %916 = vadd.xlane.f32.xlu0 %v915_v7 }
 0x7a7   :  { %1074 = vrot.lane.b32.xlu0 %v5024_v3, %s4826_s24 }
 0x81a   :  { %v914_v11 = vpop.xlane.xlu0 %913 }
 0x81b   :  { %4728 = vrcp.f32 %v914_v11 }
 0x81e   :  { %v917_v12 = vpop.xlane.xlu0 %916 }
 0x81f   :  { %4730 = vrcp.f32 %v917_v12 }
 0x822   :  { %v1075_v20 = vpop.permute.xlu0 %1074 }
 0x825   :  { %v4729_v15 = vpop.eup %4728 }
 0x826   :  { %v920_v16 = vmul.f32 %v4729_v15, %v4725_v4 }
 0x828   :  { %4375 = vmatmul.mubr.msk.f32.vlgmr.msra.gmra.mrb[6].mxu0 %vm98_vm0, %v920_v16 }
 0x829   :  { %v4731_v17 = vpop.eup %4730  ;;  %4383 = vmatpush3.xpose.msk.msra.mxu0 %vm98_vm0, %v1077_v14  ;;  %4384 = vmatprep.mubr.msk.f32.mxu0 %vm4818_vm8, %v4817_v13 }
 0x82a   :  { %v921_v19 = vmul.f32 %v4731_v17, %v4727_v6  ;;  %4392 = vmatprep.subr.mxu0 %v4817_v13 }
 0x82c   :  { %4380 = vmatmul.mubr.msk.f32.vlgmr.msra.gmra.mrb[10].mxu1 %vm98_vm0, %v921_v19  ;;  %4385 = vmatmul.mubr.msk.f32.vlgmr.msra.gmra.mrb[8].mxu0 %vm98_vm0, %v1075_v20 }
 0x82d   :  { %4388 = vmatpush3.xpose.msk.msra.mxu1 %vm98_vm0, %v1155_v18  ;;  %4389 = vmatprep.mubr.msk.f32.mxu1 %vm4818_vm8, %v4817_v13 }
 0x82e   :  { %4397 = vmatprep.subr.mxu1 %v4817_v13  ;;  %4394 = vmatprep.mubr.msk.f32.mxu0 %vm4818_vm8, %v4817_v13 }
 0x830   :  { %4390 = vmatmul.mubr.msk.f32.vlgmr.msra.gmra.mrb[12].mxu1 %vm98_vm0, %v1153_v9 }
 0x831   :  { %4399 = vmatprep.mubr.msk.f32.mxu1 %vm4818_vm8, %v4817_v13 }
 0x8fb   :  { %v5122_v10 = vpop.f32.mrb[6].mxu0 }
 0x8fc   :  { %v4376_v21 = vpop.f32.mrb[7].mxu0 }
 0x8ff   :  { %v5124_v22 = vpop.f32.mrb[10].mxu1  ;;  %v1148_v23 = vpop.f32.mrb[8].mxu0 }
 0x900   :  { %v1230_v24 = vmul.f32 0.35355338, %v1148_v23  ;;  %v4381_v25 = vpop.f32.mrb[11].mxu1  ;;  %v4386_v26 = vpop.f32.mrb[9].mxu0 }
 0x902   :  { %v1232_v29 = vadd.f32 %v1230_v24, %v5044_v8 }
 0x903   :  { %v1226_v30 = vpop.f32.mrb[12].mxu1 }
 0x904   :  { %v1231_v31 = vmul.f32 0.35355338, %v1226_v30  ;;  %v4391_v32 = vpop.f32.mrb[13].mxu1  ;;  %v1234_v33 = vsel %vm98_vm0, %v1232_v29, -inf }
 0x905   :  { %1235 = vmax.xlane.f32.xlu0 %v1234_v33  ;;  %v1775_v33 = vld [vmem:[%s5597_s8 + $0x8] sm:$0xff] }
 0x906   :  { %v1233_v34 = vadd.f32 %v1231_v31, %v5044_v8 }
 0x908   :  { %v1237_v35 = vsel %vm98_vm0, %v1233_v34, -inf }
 0x909   :  { %1238 = vmax.xlane.f32.xlu1 %v1237_v35  ;;  %v1776_v35 = vld [vmem:[%s5597_s8 + $0x10] sm:$0xff] }
 0x91a   :  { %1256 = vrot.lane.b32.xlu1 %v5024_v3, %s4827_s25 }
 0x91b   :  { %1332 = vrot.lane.b32.xlu0 %v5022_v1, %s4827_s25 }
 0x91e   :  { %1410 = vrot.lane.b32.xlu1 %v5024_v3, %s5622_s26 }
 0x922   :  { %1488 = vrot.lane.b32.xlu1 %v5022_v1, %s5622_s26 }
 0x926   :  { %1486 = vrot.lane.b32.xlu1 %v5022_v1, %s5618_s27 }
 0x992   :  { %v1236_v36 = vpop.xlane.xlu0 %1235 }
 0x993   :  { %v1240_v37 = vsub.f32 %v1232_v29, %v1236_v36  ;;  %v1777_v36 = vld [vmem:[%s5597_s8 + $0x18] sm:$0xff] }
 0x995   :  { %v1242_v38 = vmul.f32 1.442695, %v1240_v37  ;;  %v4619_v37 = vpack.c.bf16 %v1777_v36, %v1776_v35  ;;  %v2026_v36 = vld [vmem:[%s5603_s14 + $0x10] sm:$0xff] }
 0x996   :  { %v1333_v39 = vpop.permute.xlu0 %1332  ;;  %v1239_v40 = vpop.xlane.xlu1 %1238 }
 0x997   :  { %4732 = vpow2.f32 %v1242_v38  ;;  %v1241_v41 = vsub.f32 %v1233_v34, %v1239_v40  ;;  %4398 = vmatpush3.msra.mxu1 %v1333_v39 }
 0x998   :  { %4407 = vmatprep.subr.mxu1 %v4817_v13 }
 0x999   :  { %v1244_v42 = vmul.f32 1.442695, %v1241_v41 }
 0x99a   :  { %v1257_v43 = vpop.permute.xlu1 %1256 }
 0x99b   :  { %4734 = vpow2.f32 %v1244_v42  ;;  %4393 = vmatpush3.msra.mxu0 %v1257_v43 }
 0x99c   :  { %4402 = vmatprep.subr.mxu0 %v4817_v13 }
 0x99e   :  { %v1411_v52 = vpop.permute.xlu1 %1410 }
 0x9a1   :  { %v4733_v45 = vpop.eup %4732 }
 0x9a2   :  { %v1246_v47 = vsel %vm98_vm0, %v4733_v45, 0.0  ;;  %v1489_v56 = vpop.permute.xlu1 %1488 }
 0x9a3   :  { %1247 = vadd.xlane.f32.xlu0 %v1246_v47 }
 0x9a5   :  { %v4735_v48 = vpop.eup %4734 }
 0x9a6   :  { %v1249_v49 = vsel %vm98_vm0, %v4735_v48, 0.0  ;;  %v1487_v59 = vpop.permute.xlu1 %1486 }
 0x9a7   :  { %1250 = vadd.xlane.f32.xlu0 %v1249_v49 }
 0x9bd   :  { %1408 = vrot.lane.b32.xlu0 %v5024_v3, %s5618_s27  ;;  %s5631_s27 = sld [smem:[#allocation8_spill]] }
 0xa30   :  { %v1248_v50 = vpop.xlane.xlu0 %1247 }
 0xa31   :  { %4736 = vrcp.f32 %v1248_v50 }
 0xa34   :  { %v1251_v51 = vpop.xlane.xlu0 %1250 }
 0xa35   :  { %4738 = vrcp.f32 %v1251_v51 }
 0xa38   :  { %v1409_v58 = vpop.permute.xlu0 %1408 }
 0xa3b   :  { %v4737_v53 = vpop.eup %4736 }
 0xa3c   :  { %v1254_v54 = vmul.f32 %v4737_v53, %v4733_v45 }
 0xa3e   :  { %4395 = vmatmul.mubr.msk.f32.vlgmr.msra.gmra.mrb[10].mxu0 %vm98_vm0, %v1254_v54 }
 0xa3f   :  { %v4739_v55 = vpop.eup %4738  ;;  %4403 = vmatpush3.xpose.msk.msra.mxu0 %vm98_vm0, %v1411_v52  ;;  %4404 = vmatprep.mubr.msk.f32.mxu0 %vm4818_vm8, %v4817_v13 }
 0xa40   :  { %v1255_v57 = vmul.f32 %v4739_v55, %v4735_v48  ;;  %4412 = vmatprep.subr.mxu0 %v4817_v13 }
 0xa42   :  { %4400 = vmatmul.mubr.msk.f32.vlgmr.msra.gmra.mrb[14].mxu1 %vm98_vm0, %v1255_v57  ;;  %4405 = vmatmul.mubr.msk.f32.vlgmr.msra.gmra.mrb[12].mxu0 %vm98_vm0, %v1409_v58 }
 0xa43   :  { %4408 = vmatpush3.xpose.msk.msra.mxu1 %vm98_vm0, %v1489_v56  ;;  %4409 = vmatprep.mubr.msk.f32.mxu1 %vm4818_vm8, %v4817_v13  ;;  %v4098_v56 = vld [vmem:[%s5598_s9] ss:$0 sm:$0xff] }
 0xa44   :  { %4417 = vmatprep.subr.mxu1 %v4817_v13  ;;  %4414 = vmatprep.mubr.msk.f32.mxu0 %vm4818_vm8, %v4817_v13 }
 0xa46   :  { %4410 = vmatmul.mubr.msk.f32.vlgmr.msra.gmra.mrb[16].mxu1 %vm98_vm0, %v1487_v59 }
 0xa47   :  { %4419 = vmatprep.mubr.msk.f32.mxu1 %vm4818_vm8, %v4817_v13 }
 0xb11   :  { %v1328_v60 = vpop.f32.mrb[10].mxu0 }
 0xb12   :  { %v4396_v61 = vpop.f32.mrb[11].mxu0 }
 0xb15   :  { %v1404_v62 = vpop.f32.mrb[14].mxu1  ;;  %v1482_v63 = vpop.f32.mrb[12].mxu0 }
 0xb16   :  { %v1564_v0 = vmul.f32 0.35355338, %v1482_v63  ;;  %v4401_v2 = vpop.f32.mrb[15].mxu1  ;;  %v4406_v4 = vpop.f32.mrb[13].mxu0 }
 0xb18   :  { %v1566_v5 = vadd.f32 %v1564_v0, %v5044_v8 }
 0xb19   :  { %v1560_v6 = vpop.f32.mrb[16].mxu1 }
 0xb1a   :  { %v1565_v7 = vmul.f32 0.35355338, %v1560_v6  ;;  %v4411_v11 = vpop.f32.mrb[17].mxu1  ;;  %v1568_v12 = vsel %vm98_vm0, %v1566_v5, -inf }
 0xb1b   :  { %1569 = vmax.xlane.f32.xlu0 %v1568_v12  ;;  %v1914_v12 = vld [vmem:[%s5601_s12] sm:$0xff] }
 0xb1c   :  { %v1567_v14 = vadd.f32 %v1565_v7, %v5044_v8 }
 0xb1e   :  { %v1571_v15 = vsel %vm98_vm0, %v1567_v14, -inf }
 0xb1f   :  { %1572 = vmax.xlane.f32.xlu1 %v1571_v15 }
 0xb30   :  { %1590 = vrot.lane.b32.xlu1 %v5024_v3, %s5616_s3 }
 0xb34   :  { %1744 = vrot.lane.b32.xlu1 %v5122_v10, %s5614_s13 }
 0xb38   :  { %1746 = vrot.lane.b32.xlu1 %v5124_v22, %s5614_s13  ;;  %s5637_s13 = smov 24  }
 0xb3c   :  { %1754 = vrot.lane.b32.xlu1 %v1404_v62, %s5612_s28 }
 0xba8   :  { %v1570_v16 = vpop.xlane.xlu0 %1569 }
 0xba9   :  { %v1574_v17 = vsub.f32 %v1566_v5, %v1570_v16  ;;  %v1916_v16 = vld [vmem:[%s5601_s12 + $0x10] sm:$0xff] }
 0xbab   :  { %v1576_v18 = vmul.f32 1.442695, %v1574_v17  ;;  %v1917_v17 = vld [vmem:[%s5601_s12 + $0x18] sm:$0xff] }
 0xbac   :  { %v1573_v19 = vpop.xlane.xlu1 %1572 }
 0xbad   :  { %4740 = vpow2.f32 %v1576_v18  ;;  %v1575_v20 = vsub.f32 %v1567_v14, %v1573_v19  ;;  %v1915_v14 = vld [vmem:[%s5601_s12 + $0x8] sm:$0xff]  ;;  %v4627_v18 = vpack.c.bf16 %v1917_v17, %v1916_v16 }
 0xbae   :  { %v4623_v15 = vpack.c.bf16 %v1915_v14, %v1914_v12 }
 0xbaf   :  { %v1578_v9 = vmul.f32 1.442695, %v1575_v20 }
 0xbb0   :  { %v1591_v21 = vpop.permute.xlu1 %1590 }
 0xbb1   :  { %4742 = vpow2.f32 %v1578_v9  ;;  %4413 = vmatpush3.msra.mxu0 %v1591_v21 }
 0xbb4   :  { %v1745_v42 = vpop.permute.xlu1 %1744 }
 0xbb5   :  { %v1766_v47 = vsel %vm98_vm0, %v5082_v44, %v1745_v42  ;;  %v2030_v42 = vld [vmem:[%s5603_s14 + $0x30] sm:$0xff] }
 0xbb7   :  { %v4741_v3 = vpop.eup %4740 }
 0xbb8   :  { %v1580_v23 = vsel %vm98_vm0, %v4741_v3, 0.0  ;;  %v1747_v43 = vpop.permute.xlu1 %1746 }
 0xbb9   :  { %1581 = vadd.xlane.f32.xlu0 %v1580_v23  ;;  %v1767_v52 = vsel %vm98_vm0, %v5084_v46, %v1747_v43  ;;  %v2031_v43 = vld [vmem:[%s5603_s14 + $0x38] sm:$0xff] }
 0xbbb   :  { %v4743_v10 = vpop.eup %4742 }
 0xbbc   :  { %v1583_v22 = vsel %vm98_vm0, %v4743_v10, 0.0  ;;  %v1755_v48 = vpop.permute.xlu1 %1754 }
 0xbbd   :  { %1584 = vadd.xlane.f32.xlu0 %v1583_v22  ;;  %v1770_v53 = vsel %vm1768_vm11, %v1767_v52, %v1755_v48  ;;  %v4099_v22 = vld [vmem:[%s5599_s10] ss:$0 sm:$0xff] }
 0xbd3   :  { %1666 = vrot.lane.b32.xlu0 %v5022_v1, %s5616_s3  ;;  %v1774_v1 = vld [vmem:[%s5597_s8] sm:$0xff] }
 0xbd4   :  { %v4615_v34 = vpack.c.bf16 %v1775_v33, %v1774_v1  ;;  %v2024_v33 = vld [vmem:[%s5603_s14] sm:$0xff] }
 0xbd7   :  { %1752 = vrot.lane.b32.xlu0 %v1328_v60, %s5612_s28 }
 0xc46   :  { %v1582_v24 = vpop.xlane.xlu0 %1581 }
 0xc47   :  { %4744 = vrcp.f32 %v1582_v24 }
 0xc4a   :  { %v1585_v25 = vpop.xlane.xlu0 %1584 }
 0xc4b   :  { %4746 = vrcp.f32 %v1585_v25  ;;  %v4100_v25 = vld [vmem:[%s5600_s11] ss:$0 sm:$0xff] }
 0xc4e   :  { %v1667_v26 = vpop.permute.xlu0 %1666 }
 0xc4f   :  { %4418 = vmatpush3.msra.mxu1 %v1667_v26 }
 0xc50   :  { %4616 = vmatprep.subr.bf16.mxu1 %v4615_v34 }
 0xc51   :  { %v4745_v29 = vpop.eup %4744 }
 0xc52   :  { %v1588_v30 = vmul.f32 %v4745_v29, %v4741_v3  ;;  %v1753_v45 = vpop.permute.xlu0 %1752 }
 0xc53   :  { %v1769_v49 = vsel %vm1768_vm11, %v1766_v47, %v1753_v45  ;;  %v4643_v45 = vpack.c.bf16 %v2031_v43, %v2030_v42  ;;  %v4101_v47 = vld [vmem:[%s5631_s27] ss:$0 sm:$0xff]  ;;  %v4110_v42 = vld [vmem:[%s5594_s5 + $0x1] ss:$0 sm:$0xff]  ;;  %s5632_s5 = smov 72  }
 0xc54   :  { %4415 = vmatmul.mubr.msk.f32.vlgmr.msra.gmra.mrb[14].mxu0 %vm98_vm0, %v1588_v30 }
 0xc55   :  { %v4747_v31 = vpop.eup %4746 }
 0xc56   :  { %v1589_v32 = vmul.f32 %v4747_v31, %v4743_v10 }
 0xc58   :  { %4420 = vmatmul.mubr.msk.f32.vlgmr.msra.gmra.mrb[18].mxu1 %vm98_vm0, %v1589_v32 }
 0xc59   :  { %4618 = vmatpush3.bf16.msra.mxu1 %v4615_v34  ;;  %v2025_v34 = vld [vmem:[%s5603_s14 + $0x8] sm:$0xff] }
 0xc5a   :  { %4620 = vmatprep.subr.bf16.mxu1 %v4619_v37  ;;  %v4631_v35 = vpack.c.bf16 %v2025_v34, %v2024_v33 }
 0xc5c   :  { %4632 = vmatprep.subr.bf16.mxu0 %v4631_v35 }
 0xc5d   :  { %4622 = vmatpush3.bf16.msra.mxu1 %v4619_v37  ;;  %4634 = vmatpush3.bf16.msra.mxu0 %v4631_v35  ;;  %v2027_v37 = vld [vmem:[%s5603_s14 + $0x18] sm:$0xff] }
 0xc5e   :  { %4624 = vmatprep.subr.bf16.mxu1 %v4623_v15 }
 0xd27   :  { %v1662_v38 = vpop.f32.mrb[14].mxu0 }
 0xd28   :  { %1760 = vrot.lane.b32.xlu0 %v1662_v38, %s5620_s29  ;;  %v4416_v39 = vpop.f32.mrb[15].mxu0  ;;  %v4635_v38 = vpack.c.bf16 %v2027_v37, %v2026_v36 }
 0xd29   :  { %v2028_v39 = vld [vmem:[%s5603_s14 + $0x20] sm:$0xff] }
 0xd2a   :  { %4636 = vmatprep.subr.bf16.mxu0 %v4635_v38 }
 0xd2b   :  { %v1738_v40 = vpop.f32.mrb[18].mxu1  ;;  %4638 = vmatpush3.bf16.msra.mxu0 %v4635_v38  ;;  %v4109_v38 = vld [vmem:[%s5593_s4 + $0x1] ss:$0 sm:$0xff] }
 0xd2c   :  { %1762 = vrot.lane.b32.xlu1 %v1738_v40, %s5620_s29  ;;  %v4421_v41 = vpop.f32.mrb[19].mxu1  ;;  %v2029_v40 = vld [vmem:[%s5603_s14 + $0x28] sm:$0xff] }
 0xd2d   :  { %v4639_v41 = vpack.c.bf16 %v2029_v40, %v2028_v39 }
 0xd2f   :  { %4640 = vmatprep.subr.bf16.mxu0 %v4639_v41 }
 0xd30   :  { %4642 = vmatpush3.bf16.msra.mxu0 %v4639_v41 }
 0xd31   :  { %4644 = vmatprep.subr.bf16.mxu0 %v4643_v45 }
 0xd34   :  { %4646 = vmatpush3.bf16.msra.mxu0 %v4643_v45 }
 0xd35   :  { %4484 = vmatprep.subr.mxu0 %v4817_v13 }
 0xd9a   :  { %v1761_v50 = vpop.permute.xlu0 %1760 }
 0xd9b   :  { %v1772_v51 = vsel %vm1771_vm10, %v1769_v49, %v1761_v50 }
 0xd9c   :  { %4430 = vmatprep.mubr.msk.f32.mxu1 %vm272_vm7, %v1772_v51 }
 0xd9e   :  { %v1763_v54 = vpop.permute.xlu1 %1762 }
 0xd9f   :  { %v1773_v55 = vsel %vm1771_vm10, %v1770_v53, %v1763_v54 }
 0xda0   :  { %4431 = vmatmul.mubr.msk.f32.vlgmr.msra.gmra.mrb[20].mxu1 %vm272_vm7, %v1773_v55 }
 0xda1   :  { %4626 = vmatpush3.bf16.msra.mxu1 %v4623_v15 }
 0xda2   :  { %4628 = vmatprep.subr.bf16.mxu1 %v4627_v18 }
 0xda5   :  { %4630 = vmatpush3.bf16.msra.mxu1 %v4627_v18 }
 0xe73   :  { %v4432_v44 = vpop.f32.mrb[20].mxu1 }
 0xe74   :  { %v1860_v57 = vadd.f32 %v4432_v44, %v4982_v27  ;;  %v1850_v58 = vpop.f32.mrb[21].mxu1 }
 0xe75   :  { %v1859_v59 = vadd.f32 %v1850_v58, %v4984_v28 }
 0xe76   :  { %v5209_v60 = vadd.f32 %v4098_v56, %v1860_v57 }
 0xe77   :  { %v5211_v46 = vadd.f32 %v4098_v56, %v1859_v59 }
 0xe78   :  { %v1875_v61 = vsel %vm272_vm7, %v5209_v60, 0.0 }
 0xe79   :  { %1876 = vadd.xlane.f32.xlu1 %v1875_v61  ;;  %v1872_v62 = vsel %vm272_vm7, %v5211_v46, 0.0 }
 0xe7a   :  { %1873 = vadd.xlane.f32.xlu0 %v1872_v62 }
 0xf06   :  { %v1877_v63 = vpop.xlane.xlu1 %1876 }
 0xf07   :  { %v1879_v0 = vmul.f32 0.03125, %v1877_v63  ;;  %v1874_v2 = vpop.xlane.xlu0 %1873 }
 0xf08   :  { %v1878_v4 = vmul.f32 0.03125, %v1874_v2 }
 0xf09   :  { %v1881_v27 = vsub.f32 %v5209_v60, %v1879_v0 }
 0xf0a   :  { %v1880_v28 = vsub.f32 %v5211_v46, %v1878_v4 }
 0xf0b   :  { %v1883_v7 = vmul.f32 %v1881_v27, %v1881_v27 }
 0xf0c   :  { %v1882_v5 = vmul.f32 %v1880_v28, %v1880_v28 }
 0xf0d   :  { %v1887_v11 = vsel %vm272_vm7, %v1883_v7, 0.0  ;;  %v4106_v7 = vld [vmem:[%s5604_s15] ss:$0 sm:$0xff] }
 0xf0e   :  { %v1884_v6 = vsel %vm272_vm7, %v1882_v5, 0.0 }
 0xf0f   :  { %1885 = vadd.xlane.f32.xlu0 %v1884_v6 }
 0xf13   :  { %1888 = vadd.xlane.f32.xlu0 %v1887_v11 }
 0xf9c   :  { %v1886_v19 = vpop.xlane.xlu0 %1885 }
 0xf9d   :  { %v1890_v20 = vmul.f32 0.03125, %v1886_v19 }
 0xf9f   :  { %v1892_v9 = vadd.f32 1e-05, %v1890_v20 }
 0xfa0   :  { %v1889_v21 = vpop.xlane.xlu0 %1888 }
 0xfa1   :  { %4748 = vrsqrt.f32 %v1892_v9  ;;  %v1891_v3 = vmul.f32 0.03125, %v1889_v21 }
 0xfa3   :  { %v1893_v23 = vadd.f32 1e-05, %v1891_v3 }
 0xfa5   :  { %4750 = vrsqrt.f32 %v1893_v23 }
 0xfab   :  { %v4749_v10 = vpop.eup %4748 }
 0xfac   :  { %v1896_v24 = vmul.f32 %v4749_v10, %v1880_v28 }
 0xfae   :  { %v1904_v26 = vmul.f32 %v4099_v22, %v1896_v24  ;;  %v4111_v24 = vld [vmem:[%s5595_s6 + $0x20] sm:$0xff] }
 0xfaf   :  { %v4751_v29 = vpop.eup %4750 }
 0xfb0   :  { %v1897_v30 = vmul.f32 %v4751_v29, %v1881_v27  ;;  %v1912_v31 = vadd.f32 %v4100_v25, %v1904_v26  ;;  %v4113_v29 = vld [vmem:[%s5595_s6 + $0x30] sm:$0xff] }
 0xfb2   :  { %v1905_v32 = vmul.f32 %v4099_v22, %v1897_v30  ;;  %4441 = vmatprep.mubr.msk.f32.mxu1 %vm272_vm7, %v1912_v31  ;;  %v4114_v30 = vld [vmem:[%s5595_s6 + $0x38] sm:$0xff] }
 0xfb3   :  { %v4651_v31 = vpack.c.bf16 %v4114_v30, %v4113_v29 }
 0xfb4   :  { %v1913_v1 = vadd.f32 %v4100_v25, %v1905_v32  ;;  %v4112_v25 = vld [vmem:[%s5595_s6 + $0x28] sm:$0xff] }
 0xfb5   :  { %v4647_v26 = vpack.c.bf16 %v4112_v25, %v4111_v24 }
 0xfb6   :  { %4442 = vmatmul.mubr.msk.f32.vlgmr.msra.gmra.mrb[22].mxu1 %vm272_vm7, %v1913_v1 }
 0xfb7   :  { %4648 = vmatprep.subr.bf16.mxu1 %v4647_v26 }
 0xfb8   :  { %4650 = vmatpush3.bf16.msra.mxu1 %v4647_v26 }
 0xfb9   :  { %4652 = vmatprep.subr.bf16.mxu1 %v4651_v31 }
 0xfbc   :  { %4654 = vmatpush3.bf16.msra.mxu1 %v4651_v31 }
 0xfbd   :  { %4474 = vmatprep.subr.mxu1 %v4817_v13 }
0x1089   :  { %v4443_v48 = vpop.f32.mrb[22].mxu1 }
0x108a   :  { %v2003_v49 = vadd.f32 %v4443_v48, %v4101_v47  ;;  %v1997_v50 = vpop.f32.mrb[23].mxu1 }
0x108b   :  { %v1998_v51 = vadd.f32 %v4101_v47, %v1997_v50 }
0x108c   :  { %v2007_v52 = vmul.f32 %v2003_v49, %v2003_v49 }
0x108d   :  { %v2006_v53 = vmul.f32 %v1998_v51, %v1998_v51 }
0x108e   :  { %v2009_v54 = vmul.f32 %v2007_v52, %v2003_v49 }
0x108f   :  { %v2008_v55 = vmul.f32 %v2006_v53, %v1998_v51 }
0x1090   :  { %v2011_v44 = vmul.f32 0.044715, %v2009_v54 }
0x1091   :  { %v2010_v56 = vmul.f32 0.044715, %v2008_v55 }
0x1092   :  { %v2013_v57 = vadd.f32 %v2011_v44, %v2003_v49 }
0x1093   :  { %v2012_v58 = vadd.f32 %v2010_v56, %v1998_v51 }
0x1094   :  { %v2015_v59 = vmul.f32 0.7978846, %v2013_v57 }
0x1095   :  { %v2014_v61 = vmul.f32 0.7978846, %v2012_v58 }
0x1096   :  { %4752 = vtanh.f32 %v2015_v59 }
0x1097   :  { %4754 = vtanh.f32 %v2014_v61 }
0x10a0   :  { %v4753_v62 = vpop.eup %4752 }
0x10a1   :  { %v4755_v63 = vpop.eup %4754  ;;  %v2019_v0 = vadd.f32 1.0, %v4753_v62 }
0x10a2   :  { %v2018_v2 = vadd.f32 1.0, %v4755_v63 }
0x10a3   :  { %v2021_v4 = vmul.f32 0.5, %v2019_v0 }
0x10a4   :  { %v2020_v27 = vmul.f32 0.5, %v2018_v2 }
0x10a5   :  { %v2023_v5 = vmul.f32 %v2021_v4, %v2003_v49  ;;  %v4116_v49 = vld [vmem:[%s5596_s7 + $0x1] ss:$0 sm:$0xff]  ;;  %s5633_s7 = smov 104  }
0x10a6   :  { %v2022_v28 = vmul.f32 %v2020_v27, %v1998_v51 }
0x10a8   :  { %4460 = vmatprep.mubr.msk.f32.mxu0 %vm2032_vm12, %v2022_v28 }
0x10a9   :  { %4461 = vmatmul.mubr.msk.f32.vlgmr.msra.gmra.mrb[16].mxu0 %vm2032_vm12, %v2023_v5 }
0x10aa   :  { %4486 = vmatprep.mubr.msk.f32.mxu0 %vm4818_vm8, %v4817_v13 }
0x117c   :  { %v4462_v6 = vpop.f32.mrb[16].mxu0 }
0x117d   :  { %v2115_v11 = vadd.f32 %v4462_v6, %v5209_v60  ;;  %v2105_v12 = vpop.f32.mrb[17].mxu0 }
0x117e   :  { %v2114_v14 = vadd.f32 %v2105_v12, %v5211_v46 }
0x117f   :  { %v5278_v15 = vadd.f32 %v4106_v7, %v2115_v11 }
0x1180   :  { %v5280_v16 = vadd.f32 %v4106_v7, %v2114_v14 }
0x1181   :  { %v2132_v17 = vsel %vm272_vm7, %v5278_v15, 0.0 }
0x1182   :  { %2133 = vadd.xlane.f32.xlu0 %v2132_v17  ;;  %v2129_v18 = vsel %vm272_vm7, %v5280_v16, 0.0 }
0x1183   :  { %2130 = vadd.xlane.f32.xlu1 %v2129_v18 }
0x120f   :  { %v2134_v19 = vpop.xlane.xlu0 %2133 }
0x1210   :  { %v2136_v20 = vmul.f32 0.03125, %v2134_v19  ;;  %v2131_v9 = vpop.xlane.xlu1 %2130 }
0x1211   :  { %v2135_v21 = vmul.f32 0.03125, %v2131_v9 }
0x1212   :  { %v2138_v60 = vsub.f32 %v5278_v15, %v2136_v20 }
0x1213   :  { %v2137_v46 = vsub.f32 %v5280_v16, %v2135_v21 }
0x1214   :  { %v2140_v3 = vmul.f32 %v2138_v60, %v2138_v60 }
0x1215   :  { %v2139_v23 = vmul.f32 %v2137_v46, %v2137_v46 }
0x1216   :  { %v2144_v10 = vsel %vm272_vm7, %v2140_v3, 0.0 }
0x1217   :  { %2145 = vadd.xlane.f32.xlu0 %v2144_v10  ;;  %v2141_v22 = vsel %vm272_vm7, %v2139_v23, 0.0 }
0x1218   :  { %2142 = vadd.xlane.f32.xlu1 %v2141_v22 }
0x12a4   :  { %v2146_v32 = vpop.xlane.xlu0 %2145 }
0x12a5   :  { %v2148_v1 = vmul.f32 0.03125, %v2146_v32  ;;  %v2143_v33 = vpop.xlane.xlu1 %2142 }
0x12a6   :  { %v2147_v34 = vmul.f32 0.03125, %v2143_v33 }
0x12a7   :  { %v2150_v35 = vadd.f32 1e-05, %v2148_v1 }
0x12a8   :  { %v2149_v36 = vadd.f32 1e-05, %v2147_v34 }
0x12a9   :  { %4756 = vrsqrt.f32 %v2150_v35 }
0x12aa   :  { %4758 = vrsqrt.f32 %v2149_v36 }
0x12b3   :  { %v4757_v37 = vpop.eup %4756 }
0x12b4   :  { %v4759_v39 = vpop.eup %4758  ;;  %v2154_v40 = vmul.f32 %v4757_v37, %v2138_v60 }
0x12b5   :  { %v2153_v41 = vmul.f32 %v4759_v39, %v2137_v46 }
0x12b6   :  { %v2162_v43 = vmul.f32 %v4109_v38, %v2154_v40 }
0x12b7   :  { %v2161_v45 = vmul.f32 %v4109_v38, %v2153_v41 }
0x12b8   :  { %v2170_v48 = vadd.f32 %v4110_v42, %v2162_v43 }
0x12b9   :  { %v2169_v47 = vadd.f32 %v4110_v42, %v2161_v45 }
0x12bb   :  { %4471 = vmatprep.mubr.msk.f32.mxu1 %vm272_vm7, %v2169_v47 }
0x12bc   :  { %4472 = vmatmul.mubr.msk.f32.vlgmr.msra.gmra.mrb[24].mxu1 %vm272_vm7, %v2170_v48 }
0x12bd   :  { %4476 = vmatprep.mubr.msk.f32.mxu1 %vm4818_vm8, %v4817_v13 }
0x138f   :  { %v4473_v50 = vpop.f32.mrb[24].mxu1 }
0x1390   :  { %v5316_v51 = vadd.f32 %v4473_v50, %v4116_v49  ;;  %v2256_v52 = vpop.f32.mrb[25].mxu1 }
0x1391   :  { %v5318_v53 = vadd.f32 %v4116_v49, %v2256_v52 }
0x1392   :  { %2343 = vrot.lane.b32.xlu0 %v5316_v51, %s4819_s1 }
0x1393   :  { %2266 = vrot.lane.b32.xlu1 %v5318_v53, %s4819_s1  ;;  %s5634_s1 = smov 40  }
0x1404   :  { %v2344_v55 = vpop.permute.xlu0 %2343 }
0x1405   :  { %v2267_v54 = vpop.permute.xlu1 %2266 }
0x1406   :  { %4475 = vmatpush3.xpose.msk.msra.mxu1 %vm98_vm0, %v2267_v54 }
0x1407   :  { %4479 = vmatprep.subr.mxu1 %v4817_v13 }
0x1409   :  { %4477 = vmatmul.mubr.msk.f32.vlgmr.msra.gmra.mrb[26].mxu1 %vm98_vm0, %v5318_v53 }
0x140a   :  { %4480 = vmatpush3.xpose.msk.msra.mxu1 %vm98_vm0, %v2344_v55  ;;  %4481 = vmatprep.mubr.msk.f32.mxu1 %vm4818_vm8, %v4817_v13 }
0x140b   :  { %4489 = vmatprep.subr.mxu1 %v4817_v13 }
0x140d   :  { %4482 = vmatmul.mubr.msk.f32.vlgmr.msra.gmra.mrb[28].mxu1 %vm98_vm0, %v5316_v51 }
0x140e   :  { %4491 = vmatprep.mubr.msk.f32.mxu1 %vm4818_vm8, %v4817_v13 }
0x14dc   :  { %v2338_v44 = vpop.f32.mrb[26].mxu1 }
0x14dd   :  { %v2419_v56 = vmul.f32 0.35355338, %v2338_v44  ;;  %v4478_v57 = vpop.f32.mrb[27].mxu1 }
0x14df   :  { %v2421_v58 = vadd.f32 %v2419_v56, %v5044_v8 }
0x14e0   :  { %v2415_v59 = vpop.f32.mrb[28].mxu1 }
0x14e1   :  { %v2420_v61 = vmul.f32 0.35355338, %v2415_v59  ;;  %v4483_v62 = vpop.f32.mrb[29].mxu1  ;;  %v2423_v63 = vsel %vm98_vm0, %v2421_v58, -inf }
0x14e2   :  { %2424 = vmax.xlane.f32.xlu1 %v2423_v63 }
0x14e3   :  { %v2422_v0 = vadd.f32 %v2420_v61, %v5044_v8 }
0x14e5   :  { %v2426_v2 = vsel %vm98_vm0, %v2422_v0, -inf }
0x14e6   :  { %2427 = vmax.xlane.f32.xlu0 %v2426_v2 }
0x14f3   :  { %2445 = vrot.lane.b32.xlu1 %v5318_v53, %s4821_s20 }
0x14f7   :  { %2599 = vrot.lane.b32.xlu1 %v5318_v53, %s4822_s21 }
0x14fb   :  { %2677 = vrot.lane.b32.xlu1 %v5316_v51, %s4822_s21  ;;  %s5636_s21 = smov 16  }
0x14fc   :  { %2521 = vrot.lane.b32.xlu0 %v5316_v51, %s4821_s20  ;;  %s5635_s20 = smov 8  }
0x156f   :  { %v2425_v4 = vpop.xlane.xlu1 %2424 }
0x1570   :  { %v2429_v27 = vsub.f32 %v2421_v58, %v2425_v4 }
0x1572   :  { %v2431_v28 = vmul.f32 1.442695, %v2429_v27 }
0x1573   :  { %v2446_v5 = vpop.permute.xlu1 %2445  ;;  %v2428_v6 = vpop.xlane.xlu0 %2427 }
0x1574   :  { %4760 = vpow2.f32 %v2431_v28  ;;  %v2430_v7 = vsub.f32 %v2422_v0, %v2428_v6  ;;  %4485 = vmatpush3.msra.mxu0 %v2446_v5 }
0x1575   :  { %4494 = vmatprep.subr.mxu0 %v4817_v13 }
0x1576   :  { %v2433_v11 = vmul.f32 1.442695, %v2430_v7 }
0x1577   :  { %v2522_v12 = vpop.permute.xlu0 %2521  ;;  %v2600_v20 = vpop.permute.xlu1 %2599 }
0x1578   :  { %4762 = vpow2.f32 %v2433_v11  ;;  %4490 = vmatpush3.msra.mxu1 %v2522_v12 }
0x1579   :  { %4499 = vmatprep.subr.mxu1 %v4817_v13 }
0x157b   :  { %v2678_v9 = vpop.permute.xlu1 %2677 }
0x157e   :  { %v4761_v14 = vpop.eup %4760 }
0x157f   :  { %v2435_v17 = vsel %vm98_vm0, %v4761_v14, 0.0 }
0x1580   :  { %2436 = vadd.xlane.f32.xlu1 %v2435_v17 }
0x1582   :  { %v4763_v18 = vpop.eup %4762 }
0x1583   :  { %v2438_v19 = vsel %vm98_vm0, %v4763_v18, 0.0 }
0x1584   :  { %2439 = vadd.xlane.f32.xlu0 %v2438_v19 }
0x1591   :  { %2675 = vrot.lane.b32.xlu1 %v5316_v51, %s4823_s22 }
0x159a   :  { %2597 = vrot.lane.b32.xlu0 %v5318_v53, %s4823_s22 }
0x160d   :  { %v2437_v21 = vpop.xlane.xlu1 %2436 }
0x160e   :  { %4764 = vrcp.f32 %v2437_v21 }
0x1611   :  { %v2440_v60 = vpop.xlane.xlu0 %2439  ;;  %v2676_v24 = vpop.permute.xlu1 %2675 }
0x1612   :  { %4766 = vrcp.f32 %v2440_v60 }
0x1615   :  { %v2598_v22 = vpop.permute.xlu0 %2597 }
0x1618   :  { %v4765_v46 = vpop.eup %4764 }
0x1619   :  { %v2443_v3 = vmul.f32 %v4765_v46, %v4761_v14 }
0x161b   :  { %4487 = vmatmul.mubr.msk.f32.vlgmr.msra.gmra.mrb[18].mxu0 %vm98_vm0, %v2443_v3 }
0x161c   :  { %v4767_v23 = vpop.eup %4766  ;;  %4495 = vmatpush3.xpose.msk.msra.mxu0 %vm98_vm0, %v2600_v20  ;;  %4496 = vmatprep.mubr.msk.f32.mxu0 %vm4818_vm8, %v4817_v13 }
0x161d   :  { %v2444_v10 = vmul.f32 %v4767_v23, %v4763_v18  ;;  %4504 = vmatprep.subr.mxu0 %v4817_v13 }
0x161f   :  { %4492 = vmatmul.mubr.msk.f32.vlgmr.msra.gmra.mrb[30].mxu1 %vm98_vm0, %v2444_v10  ;;  %4497 = vmatmul.mubr.msk.f32.vlgmr.msra.gmra.mrb[20].mxu0 %vm98_vm0, %v2598_v22 }
0x1620   :  { %4500 = vmatpush3.xpose.msk.msra.mxu1 %vm98_vm0, %v2678_v9  ;;  %4501 = vmatprep.mubr.msk.f32.mxu1 %vm4818_vm8, %v4817_v13 }
0x1621   :  { %4509 = vmatprep.subr.mxu1 %v4817_v13  ;;  %4506 = vmatprep.mubr.msk.f32.mxu0 %vm4818_vm8, %v4817_v13 }
0x1623   :  { %4502 = vmatmul.mubr.msk.f32.vlgmr.msra.gmra.mrb[32].mxu1 %vm98_vm0, %v2676_v24 }
0x1624   :  { %4511 = vmatprep.mubr.msk.f32.mxu1 %vm4818_vm8, %v4817_v13 }
0x16ee   :  { %v5372_v25 = vpop.f32.mrb[18].mxu0 }
0x16ef   :  { %v4488_v26 = vpop.f32.mrb[19].mxu0 }
0x16f2   :  { %v5374_v29 = vpop.f32.mrb[30].mxu1  ;;  %v2671_v30 = vpop.f32.mrb[20].mxu0 }
0x16f3   :  { %v2753_v31 = vmul.f32 0.35355338, %v2671_v30  ;;  %v4493_v32 = vpop.f32.mrb[31].mxu1  ;;  %v4498_v1 = vpop.f32.mrb[21].mxu0 }
0x16f5   :  { %v2755_v33 = vadd.f32 %v2753_v31, %v5044_v8 }
0x16f6   :  { %v2749_v34 = vpop.f32.mrb[32].mxu1 }
0x16f7   :  { %v2754_v35 = vmul.f32 0.35355338, %v2749_v34  ;;  %v4503_v36 = vpop.f32.mrb[33].mxu1  ;;  %v2757_v37 = vsel %vm98_vm0, %v2755_v33, -inf }
0x16f8   :  { %2758 = vmax.xlane.f32.xlu0 %v2757_v37 }
0x16f9   :  { %v2756_v38 = vadd.f32 %v2754_v35, %v5044_v8 }
0x16fb   :  { %v2760_v39 = vsel %vm98_vm0, %v2756_v38, -inf }
0x16fc   :  { %2761 = vmax.xlane.f32.xlu1 %v2760_v39 }
0x170d   :  { %2779 = vrot.lane.b32.xlu1 %v5318_v53, %s4824_s2 }
0x170e   :  { %2855 = vrot.lane.b32.xlu0 %v5316_v51, %s4824_s2 }
0x1711   :  { %2933 = vrot.lane.b32.xlu1 %v5318_v53, %s4825_s23 }
0x1715   :  { %3011 = vrot.lane.b32.xlu1 %v5316_v51, %s4825_s23 }
0x1719   :  { %3009 = vrot.lane.b32.xlu1 %v5316_v51, %s4826_s24 }
0x1785   :  { %v2759_v40 = vpop.xlane.xlu0 %2758 }
0x1786   :  { %v2763_v41 = vsub.f32 %v2755_v33, %v2759_v40 }
0x1788   :  { %v2765_v42 = vmul.f32 1.442695, %v2763_v41 }
0x1789   :  { %v2856_v43 = vpop.permute.xlu0 %2855  ;;  %v2762_v45 = vpop.xlane.xlu1 %2761 }
0x178a   :  { %4768 = vpow2.f32 %v2765_v42  ;;  %v2764_v47 = vsub.f32 %v2756_v38, %v2762_v45  ;;  %4510 = vmatpush3.msra.mxu1 %v2856_v43 }
0x178b   :  { %4519 = vmatprep.subr.mxu1 %v4817_v13 }
0x178c   :  { %v2767_v48 = vmul.f32 1.442695, %v2764_v47 }
0x178d   :  { %v2780_v49 = vpop.permute.xlu1 %2779 }
0x178e   :  { %4770 = vpow2.f32 %v2767_v48  ;;  %4505 = vmatpush3.msra.mxu0 %v2780_v49 }
0x178f   :  { %4514 = vmatprep.subr.mxu0 %v4817_v13 }
0x1791   :  { %v2934_v57 = vpop.permute.xlu1 %2933 }
0x1794   :  { %v4769_v50 = vpop.eup %4768 }
0x1795   :  { %v2769_v52 = vsel %vm98_vm0, %v4769_v50, 0.0  ;;  %v3012_v62 = vpop.permute.xlu1 %3011 }
0x1796   :  { %2770 = vadd.xlane.f32.xlu0 %v2769_v52 }
0x1798   :  { %v4771_v54 = vpop.eup %4770 }
0x1799   :  { %v2772_v55 = vsel %vm98_vm0, %v4771_v54, 0.0  ;;  %v3010_v2 = vpop.permute.xlu1 %3009 }
0x179a   :  { %2773 = vadd.xlane.f32.xlu0 %v2772_v55 }
0x17b0   :  { %2931 = vrot.lane.b32.xlu0 %v5318_v53, %s4826_s24 }
0x1823   :  { %v2771_v44 = vpop.xlane.xlu0 %2770 }
0x1824   :  { %4772 = vrcp.f32 %v2771_v44 }
0x1827   :  { %v2774_v56 = vpop.xlane.xlu0 %2773 }
0x1828   :  { %4774 = vrcp.f32 %v2774_v56 }
0x182b   :  { %v2932_v0 = vpop.permute.xlu0 %2931 }
0x182e   :  { %v4773_v58 = vpop.eup %4772 }
0x182f   :  { %v2777_v59 = vmul.f32 %v4773_v58, %v4769_v50 }
0x1831   :  { %4507 = vmatmul.mubr.msk.f32.vlgmr.msra.gmra.mrb[22].mxu0 %vm98_vm0, %v2777_v59 }
0x1832   :  { %v4775_v61 = vpop.eup %4774  ;;  %4515 = vmatpush3.xpose.msk.msra.mxu0 %vm98_vm0, %v2934_v57  ;;  %4516 = vmatprep.mubr.msk.f32.mxu0 %vm4818_vm8, %v4817_v13 }
0x1833   :  { %v2778_v63 = vmul.f32 %v4775_v61, %v4771_v54  ;;  %4524 = vmatprep.subr.mxu0 %v4817_v13 }
0x1835   :  { %4512 = vmatmul.mubr.msk.f32.vlgmr.msra.gmra.mrb[34].mxu1 %vm98_vm0, %v2778_v63  ;;  %4517 = vmatmul.mubr.msk.f32.vlgmr.msra.gmra.mrb[24].mxu0 %vm98_vm0, %v2932_v0 }
0x1836   :  { %4520 = vmatpush3.xpose.msk.msra.mxu1 %vm98_vm0, %v3012_v62  ;;  %4521 = vmatprep.mubr.msk.f32.mxu1 %vm4818_vm8, %v4817_v13 }
0x1837   :  { %4529 = vmatprep.subr.mxu1 %v4817_v13  ;;  %4526 = vmatprep.mubr.msk.f32.mxu0 %vm4818_vm8, %v4817_v13 }
0x1839   :  { %4522 = vmatmul.mubr.msk.f32.vlgmr.msra.gmra.mrb[36].mxu1 %vm98_vm0, %v3010_v2 }
0x183a   :  { %4531 = vmatprep.mubr.msk.f32.mxu1 %vm4818_vm8, %v4817_v13 }
0x1904   :  { %v5412_v4 = vpop.f32.mrb[22].mxu0 }
0x1905   :  { %v4508_v27 = vpop.f32.mrb[23].mxu0 }
0x1908   :  { %v5414_v28 = vpop.f32.mrb[34].mxu1  ;;  %v3005_v5 = vpop.f32.mrb[24].mxu0 }
0x1909   :  { %v3087_v6 = vmul.f32 0.35355338, %v3005_v5  ;;  %v4513_v7 = vpop.f32.mrb[35].mxu1  ;;  %v4518_v11 = vpop.f32.mrb[25].mxu0 }
0x190b   :  { %v3089_v12 = vadd.f32 %v3087_v6, %v5044_v8 }
0x190c   :  { %v3083_v14 = vpop.f32.mrb[36].mxu1 }
0x190d   :  { %v3088_v17 = vmul.f32 0.35355338, %v3083_v14  ;;  %v4523_v18 = vpop.f32.mrb[37].mxu1  ;;  %v3091_v19 = vsel %vm98_vm0, %v3089_v12, -inf }
0x190e   :  { %3092 = vmax.xlane.f32.xlu0 %v3091_v19  ;;  %v4145_v19 = vld [vmem:[%s5597_s8 + $0x30] sm:$0xff] }
0x190f   :  { %v3090_v20 = vadd.f32 %v3088_v17, %v5044_v8  ;;  %v4144_v17 = vld [vmem:[%s5597_s8 + $0x28] sm:$0xff] }
0x1911   :  { %v3094_v9 = vsel %vm98_vm0, %v3090_v20, -inf }
0x1912   :  { %3095 = vmax.xlane.f32.xlu1 %v3094_v9 }
0x1923   :  { %3113 = vrot.lane.b32.xlu1 %v5318_v53, %s4827_s25 }
0x1924   :  { %3189 = vrot.lane.b32.xlu0 %v5316_v51, %s4827_s25 }
0x1927   :  { %3267 = vrot.lane.b32.xlu1 %v5318_v53, %s5632_s5 }
0x192b   :  { %3345 = vrot.lane.b32.xlu1 %v5316_v51, %s5632_s5 }
0x192f   :  { %3343 = vrot.lane.b32.xlu1 %v5316_v51, %s5633_s7 }
0x199b   :  { %v3093_v21 = vpop.xlane.xlu0 %3092 }
0x199c   :  { %v3097_v60 = vsub.f32 %v3089_v12, %v3093_v21 }
0x199e   :  { %v3099_v46 = vmul.f32 1.442695, %v3097_v60 }
0x199f   :  { %v3190_v3 = vpop.permute.xlu0 %3189  ;;  %v3096_v23 = vpop.xlane.xlu1 %3095 }
0x19a0   :  { %4776 = vpow2.f32 %v3099_v46  ;;  %v3098_v10 = vsub.f32 %v3090_v20, %v3096_v23  ;;  %4530 = vmatpush3.msra.mxu1 %v3190_v3  ;;  %v4146_v20 = vld [vmem:[%s5597_s8 + $0x38] sm:$0xff] }
0x19a1   :  { %4539 = vmatprep.subr.mxu1 %v4817_v13  ;;  %v4659_v9 = vpack.c.bf16 %v4146_v20, %v4145_v19  ;;  %v4166_v19 = vld [vmem:[%s5603_s14 + $0x58] sm:$0xff] }
0x19a2   :  { %v3101_v22 = vmul.f32 1.442695, %v3098_v10 }
0x19a3   :  { %v3114_v24 = vpop.permute.xlu1 %3113 }
0x19a4   :  { %4778 = vpow2.f32 %v3101_v22  ;;  %4525 = vmatpush3.msra.mxu0 %v3114_v24 }
0x19a5   :  { %4534 = vmatprep.subr.mxu0 %v4817_v13 }
0x19a7   :  { %v3268_v34 = vpop.permute.xlu1 %3267 }
0x19aa   :  { %v4777_v26 = vpop.eup %4776 }
0x19ab   :  { %v3103_v30 = vsel %vm98_vm0, %v4777_v26, 0.0  ;;  %v3346_v38 = vpop.permute.xlu1 %3345 }
0x19ac   :  { %3104 = vadd.xlane.f32.xlu0 %v3103_v30 }
0x19ae   :  { %v4779_v31 = vpop.eup %4778 }
0x19af   :  { %v3106_v32 = vsel %vm98_vm0, %v4779_v31, 0.0  ;;  %v3344_v41 = vpop.permute.xlu1 %3343 }
0x19b0   :  { %3107 = vadd.xlane.f32.xlu0 %v3106_v32 }
0x19c6   :  { %3265 = vrot.lane.b32.xlu0 %v5318_v53, %s5633_s7 }
0x1a39   :  { %v3105_v1 = vpop.xlane.xlu0 %3104 }
0x1a3a   :  { %4780 = vrcp.f32 %v3105_v1 }
0x1a3d   :  { %v3108_v33 = vpop.xlane.xlu0 %3107 }
0x1a3e   :  { %4782 = vrcp.f32 %v3108_v33 }
0x1a41   :  { %v3266_v40 = vpop.permute.xlu0 %3265 }
0x1a44   :  { %v4781_v35 = vpop.eup %4780 }
0x1a45   :  { %v3111_v36 = vmul.f32 %v4781_v35, %v4777_v26 }
0x1a47   :  { %4527 = vmatmul.mubr.msk.f32.vlgmr.msra.gmra.mrb[26].mxu0 %vm98_vm0, %v3111_v36 }
0x1a48   :  { %v4783_v37 = vpop.eup %4782  ;;  %4535 = vmatpush3.xpose.msk.msra.mxu0 %vm98_vm0, %v3268_v34  ;;  %4536 = vmatprep.mubr.msk.f32.mxu0 %vm4818_vm8, %v4817_v13 }
0x1a49   :  { %v3112_v39 = vmul.f32 %v4783_v37, %v4779_v31  ;;  %4544 = vmatprep.subr.mxu0 %v4817_v13 }
0x1a4b   :  { %4532 = vmatmul.mubr.msk.f32.vlgmr.msra.gmra.mrb[38].mxu1 %vm98_vm0, %v3112_v39  ;;  %4537 = vmatmul.mubr.msk.f32.vlgmr.msra.gmra.mrb[28].mxu0 %vm98_vm0, %v3266_v40 }
0x1a4c   :  { %4540 = vmatpush3.xpose.msk.msra.mxu1 %vm98_vm0, %v3346_v38  ;;  %4541 = vmatprep.mubr.msk.f32.mxu1 %vm4818_vm8, %v4817_v13 }
0x1a4d   :  { %4549 = vmatprep.subr.mxu1 %v4817_v13  ;;  %4546 = vmatprep.mubr.msk.f32.mxu0 %vm4818_vm8, %v4817_v13 }
0x1a4f   :  { %4542 = vmatmul.mubr.msk.f32.vlgmr.msra.gmra.mrb[40].mxu1 %vm98_vm0, %v3344_v41 }
0x1a50   :  { %4551 = vmatprep.mubr.msk.f32.mxu1 %vm4818_vm8, %v4817_v13 }
0x1b1a   :  { %v3185_v42 = vpop.f32.mrb[26].mxu0 }
0x1b1b   :  { %v4528_v43 = vpop.f32.mrb[27].mxu0 }
0x1b1e   :  { %v3261_v45 = vpop.f32.mrb[38].mxu1  ;;  %v3339_v47 = vpop.f32.mrb[28].mxu0 }
0x1b1f   :  { %v3421_v48 = vmul.f32 0.35355338, %v3339_v47  ;;  %v4533_v49 = vpop.f32.mrb[39].mxu1  ;;  %v4538_v50 = vpop.f32.mrb[29].mxu0 }
0x1b21   :  { %v3423_v52 = vadd.f32 %v3421_v48, %v5044_v8 }
0x1b22   :  { %v3417_v54 = vpop.f32.mrb[40].mxu1 }
0x1b23   :  { %v3422_v55 = vmul.f32 0.35355338, %v3417_v54  ;;  %v4543_v44 = vpop.f32.mrb[41].mxu1  ;;  %v3425_v56 = vsel %vm98_vm0, %v3423_v52, -inf }
0x1b24   :  { %3426 = vmax.xlane.f32.xlu0 %v3425_v56  ;;  %v4156_v44 = vld [vmem:[%s5601_s12 + $0x28] sm:$0xff] }
0x1b25   :  { %v3424_v57 = vadd.f32 %v3422_v55, %v5044_v8  ;;  %v4155_v55 = vld [vmem:[%s5601_s12 + $0x20] sm:$0xff] }
0x1b26   :  { %v4663_v56 = vpack.c.bf16 %v4156_v44, %v4155_v55 }
0x1b27   :  { %v3428_v58 = vsel %vm98_vm0, %v3424_v57, -inf }
0x1b28   :  { %3429 = vmax.xlane.f32.xlu1 %v3428_v58  ;;  %v4158_v58 = vld [vmem:[%s5601_s12 + $0x38] sm:$0xff] }
0x1b39   :  { %3447 = vrot.lane.b32.xlu1 %v5318_v53, %s5634_s1 }
0x1b3d   :  { %3601 = vrot.lane.b32.xlu1 %v5412_v4, %s5635_s20 }
0x1b41   :  { %3603 = vrot.lane.b32.xlu1 %v5414_v28, %s5635_s20  ;;  %s4804_s20 = scalar_lea.hbm %s5607_s18, 16 }
0x1b42   :  { %p4805_p0 = scmp.ne.s32.totalorder %s5607_s18, %s4804_s20  ;;  %p4808_p1 = scmp.lt.u32.totalorder %s4804_s20, %s5607_s18 }
0x1b44   :  { %p4810_p2 = pnand %p4808_p1, %p4805_p0 }
0x1b45   :  { %3611 = vrot.lane.b32.xlu1 %v3261_v45, %s5636_s21 }
0x1bb1   :  { %v3427_v13 = vpop.xlane.xlu0 %3426 }
0x1bb2   :  { %v3431_v59 = vsub.f32 %v3423_v52, %v3427_v13 }
0x1bb4   :  { %v3433_v61 = vmul.f32 1.442695, %v3431_v59 }
0x1bb5   :  { %v3430_v62 = vpop.xlane.xlu1 %3429 }
0x1bb6   :  { %4784 = vpow2.f32 %v3433_v61  ;;  %v3432_v8 = vsub.f32 %v3424_v57, %v3430_v62  ;;  %v4157_v57 = vld [vmem:[%s5601_s12 + $0x30] sm:$0xff] }
0x1bb7   :  { %v4667_v13 = vpack.c.bf16 %v4158_v58, %v4157_v57 }
0x1bb8   :  { %v3435_v63 = vmul.f32 1.442695, %v3432_v8 }
0x1bb9   :  { %v3448_v0 = vpop.permute.xlu1 %3447 }
0x1bba   :  { %4786 = vpow2.f32 %v3435_v63  ;;  %4545 = vmatpush3.msra.mxu0 %v3448_v0 }
0x1bbd   :  { %v3602_v23 = vpop.permute.xlu1 %3601 }
0x1bbe   :  { %v3623_v24 = vsel %vm98_vm0, %v5372_v25, %v3602_v23  ;;  %v4150_v25 = vld [vmem:[%s5598_s9 + $0x1] ss:$0 sm:$0xff] }
0x1bc0   :  { %v4785_v2 = vpop.eup %4784 }
0x1bc1   :  { %v3437_v53 = vsel %vm98_vm0, %v4785_v2, 0.0  ;;  %v3604_v10 = vpop.permute.xlu1 %3603 }
0x1bc2   :  { %3438 = vadd.xlane.f32.xlu0 %v3437_v53  ;;  %v3624_v1 = vsel %vm98_vm0, %v5374_v29, %v3604_v10  ;;  %v4153_v53 = vld [vmem:[%s5599_s10 + $0x1] ss:$0 sm:$0xff] }
0x1bc3   :  { %v4160_v10 = vld [vmem:[%s5631_s27 + $0x1] ss:$0 sm:$0xff] }
0x1bc4   :  { %v4787_v4 = vpop.eup %4786 }
0x1bc5   :  { %v3440_v27 = vsel %vm98_vm0, %v4787_v4, 0.0  ;;  %v3612_v26 = vpop.permute.xlu1 %3611 }
0x1bc6   :  { %3441 = vadd.xlane.f32.xlu0 %v3440_v27  ;;  %v3626_v33 = vsel %vm1768_vm11, %v3624_v1, %v3612_v26  ;;  %v4154_v27 = vld [vmem:[%s5600_s11 + $0x1] ss:$0 sm:$0xff] }
0x1bdc   :  { %3523 = vrot.lane.b32.xlu0 %v5316_v51, %s5634_s1  ;;  %v4143_v51 = vld [vmem:[%s5597_s8 + $0x20] sm:$0xff] }
0x1bdd   :  { %v4655_v18 = vpack.c.bf16 %v4144_v17, %v4143_v51  ;;  %v4164_v51 = vld [vmem:[%s5603_s14 + $0x48] sm:$0xff] }
0x1bdf   :  { %4656 = vmatprep.subr.bf16.mxu0 %v4655_v18 }
0x1be0   :  { %3609 = vrot.lane.b32.xlu0 %v3185_v42, %s5636_s21 }
0x1c4f   :  { %v3439_v28 = vpop.xlane.xlu0 %3438 }
0x1c50   :  { %4788 = vrcp.f32 %v3439_v28 }
0x1c53   :  { %v3442_v5 = vpop.xlane.xlu0 %3441 }
0x1c54   :  { %4790 = vrcp.f32 %v3442_v5 }
0x1c57   :  { %v3524_v6 = vpop.permute.xlu0 %3523 }
0x1c58   :  { %4550 = vmatpush3.msra.mxu1 %v3524_v6 }
0x1c59   :  { %4664 = vmatprep.subr.bf16.mxu1 %v4663_v56 }
0x1c5a   :  { %v4789_v7 = vpop.eup %4788 }
0x1c5b   :  { %v3445_v11 = vmul.f32 %v4789_v7, %v4785_v2  ;;  %v3610_v22 = vpop.permute.xlu0 %3609 }
0x1c5c   :  { %v3625_v30 = vsel %vm1768_vm11, %v3623_v24, %v3610_v22 }
0x1c5d   :  { %4547 = vmatmul.mubr.msk.f32.vlgmr.msra.gmra.mrb[30].mxu0 %vm98_vm0, %v3445_v11 }
0x1c5e   :  { %v4791_v12 = vpop.eup %4790  ;;  %4658 = vmatpush3.bf16.msra.mxu0 %v4655_v18  ;;  %v4165_v18 = vld [vmem:[%s5603_s14 + $0x50] sm:$0xff] }
0x1c5f   :  { %v3446_v14 = vmul.f32 %v4791_v12, %v4787_v4  ;;  %4660 = vmatprep.subr.bf16.mxu0 %v4659_v9  ;;  %v4675_v20 = vpack.c.bf16 %v4166_v19, %v4165_v18 }
0x1c61   :  { %4552 = vmatmul.mubr.msk.f32.vlgmr.msra.gmra.mrb[42].mxu1 %vm98_vm0, %v3446_v14  ;;  %v4163_v14 = vld [vmem:[%s5603_s14 + $0x40] sm:$0xff] }
0x1c62   :  { %4662 = vmatpush3.bf16.msra.mxu0 %v4659_v9  ;;  %4666 = vmatpush3.bf16.msra.mxu1 %v4663_v56  ;;  %v4671_v17 = vpack.c.bf16 %v4164_v51, %v4163_v14  ;;  %v4167_v9 = vld [vmem:[%s5603_s14 + $0x60] sm:$0xff] }
0x1c63   :  { %4668 = vmatprep.subr.bf16.mxu1 %v4667_v13  ;;  %v4176_v14 = vld [vmem:[%s5606_s17] ss:$0 sm:$0xff] }
0x1c64   :  { %4672 = vmatprep.subr.bf16.mxu0 %v4671_v17 }
0x1c66   :  { %4670 = vmatpush3.bf16.msra.mxu1 %v4667_v13 }
0x1d30   :  { %v3519_v21 = vpop.f32.mrb[30].mxu0 }
0x1d31   :  { %3617 = vrot.lane.b32.xlu0 %v3519_v21, %s5637_s13  ;;  %v4548_v60 = vpop.f32.mrb[31].mxu0  ;;  %v4168_v21 = vld [vmem:[%s5603_s14 + $0x68] sm:$0xff] }
0x1d32   :  { %v4679_v60 = vpack.c.bf16 %v4168_v21, %v4167_v9 }
0x1d34   :  { %v3595_v46 = vpop.f32.mrb[42].mxu1 }
0x1d35   :  { %3619 = vrot.lane.b32.xlu1 %v3595_v46, %s5637_s13  ;;  %v4553_v3 = vpop.f32.mrb[43].mxu1  ;;  %v4169_v46 = vld [vmem:[%s5603_s14 + $0x70] sm:$0xff] }
0x1d36   :  { %v4170_v3 = vld [vmem:[%s5603_s14 + $0x78] sm:$0xff] }
0x1d37   :  { %v4683_v23 = vpack.c.bf16 %v4170_v3, %v4169_v46 }
0x1da3   :  { %v3618_v31 = vpop.permute.xlu0 %3617 }
0x1da4   :  { %v3627_v32 = vsel %vm1771_vm10, %v3625_v30, %v3618_v31 }
0x1da5   :  { %4562 = vmatprep.mubr.msk.f32.mxu0 %vm272_vm7, %v3627_v32 }
0x1da7   :  { %v3620_v34 = vpop.permute.xlu1 %3619 }
0x1da8   :  { %v3628_v35 = vsel %vm1771_vm10, %v3626_v33, %v3620_v34 }
0x1da9   :  { %4563 = vmatmul.mubr.msk.f32.vlgmr.msra.gmra.mrb[32].mxu0 %vm272_vm7, %v3628_v35 }
0x1daa   :  { %4674 = vmatpush3.bf16.msra.mxu0 %v4671_v17 }
0x1dab   :  { %4676 = vmatprep.subr.bf16.mxu0 %v4675_v20 }
0x1dae   :  { %4678 = vmatpush3.bf16.msra.mxu0 %v4675_v20 }
0x1daf   :  { %4680 = vmatprep.subr.bf16.mxu0 %v4679_v60 }
0x1db2   :  { %4682 = vmatpush3.bf16.msra.mxu0 %v4679_v60 }
0x1db3   :  { %4684 = vmatprep.subr.bf16.mxu0 %v4683_v23 }
0x1db6   :  { %4686 = vmatpush3.bf16.msra.mxu0 %v4683_v23 }
0x1e7c   :  { %v4564_v36 = vpop.f32.mrb[32].mxu0 }
0x1e7d   :  { %v3716_v37 = vadd.f32 %v4564_v36, %v5278_v15  ;;  %v3706_v38 = vpop.f32.mrb[33].mxu0 }
0x1e7e   :  { %v3715_v39 = vadd.f32 %v3706_v38, %v5280_v16 }
0x1e7f   :  { %v5499_v40 = vadd.f32 %v4150_v25, %v3716_v37 }
0x1e80   :  { %v5501_v29 = vadd.f32 %v4150_v25, %v3715_v39 }
0x1e81   :  { %v3734_v41 = vsel %vm272_vm7, %v5499_v40, 0.0 }
0x1e82   :  { %3735 = vadd.xlane.f32.xlu1 %v3734_v41  ;;  %v3731_v42 = vsel %vm272_vm7, %v5501_v29, 0.0 }
0x1e83   :  { %3732 = vadd.xlane.f32.xlu0 %v3731_v42 }
0x1f0f   :  { %v3736_v43 = vpop.xlane.xlu1 %3735 }
0x1f10   :  { %v3738_v45 = vmul.f32 0.03125, %v3736_v43  ;;  %v3733_v47 = vpop.xlane.xlu0 %3732 }
0x1f11   :  { %v3737_v48 = vmul.f32 0.03125, %v3733_v47 }
0x1f12   :  { %v3740_v15 = vsub.f32 %v5499_v40, %v3738_v45 }
0x1f13   :  { %v3739_v16 = vsub.f32 %v5501_v29, %v3737_v48 }
0x1f14   :  { %v3742_v52 = vmul.f32 %v3740_v15, %v3740_v15 }
0x1f15   :  { %v3741_v49 = vmul.f32 %v3739_v16, %v3739_v16 }
0x1f16   :  { %v3746_v54 = vsel %vm272_vm7, %v3742_v52, 0.0 }
0x1f17   :  { %v3743_v50 = vsel %vm272_vm7, %v3741_v49, 0.0  ;;  %v4174_v49 = vld [vmem:[%s5604_s15 + $0x1] ss:$0 sm:$0xff] }
0x1f18   :  { %3744 = vadd.xlane.f32.xlu0 %v3743_v50 }
0x1f1c   :  { %3747 = vadd.xlane.f32.xlu0 %v3746_v54 }
0x1fa5   :  { %v3745_v59 = vpop.xlane.xlu0 %3744 }
0x1fa6   :  { %v3749_v61 = vmul.f32 0.03125, %v3745_v59 }
0x1fa8   :  { %v3751_v62 = vadd.f32 1e-05, %v3749_v61 }
0x1fa9   :  { %v3748_v8 = vpop.xlane.xlu0 %3747 }
0x1faa   :  { %4792 = vrsqrt.f32 %v3751_v62  ;;  %v3750_v63 = vmul.f32 0.03125, %v3748_v8 }
0x1fac   :  { %v3752_v0 = vadd.f32 1e-05, %v3750_v63 }
0x1fae   :  { %4794 = vrsqrt.f32 %v3752_v0 }
0x1fb4   :  { %v4793_v2 = vpop.eup %4792 }
0x1fb5   :  { %v3755_v4 = vmul.f32 %v4793_v2, %v3739_v16 }
0x1fb7   :  { %v3763_v28 = vmul.f32 %v4153_v53, %v3755_v4 }
0x1fb8   :  { %v4795_v5 = vpop.eup %4794 }
0x1fb9   :  { %v3756_v6 = vmul.f32 %v4795_v5, %v3740_v15  ;;  %v3771_v7 = vadd.f32 %v4154_v27, %v3763_v28 }
0x1fbb   :  { %v3764_v11 = vmul.f32 %v4153_v53, %v3756_v6  ;;  %4573 = vmatprep.mubr.msk.f32.mxu1 %vm272_vm7, %v3771_v7  ;;  %v4175_v7 = vld [vmem:[%s5605_s16] ss:$0 sm:$0xff] }
0x1fbd   :  { %v3772_v12 = vadd.f32 %v4154_v27, %v3764_v11 }
0x1fbf   :  { %4574 = vmatmul.mubr.msk.f32.vlgmr.msra.gmra.mrb[44].mxu1 %vm272_vm7, %v3772_v12 }
0x2092   :  { %v4575_v22 = vpop.f32.mrb[44].mxu1 }
0x2093   :  { %v3864_v24 = vadd.f32 %v4575_v22, %v4160_v10  ;;  %v3858_v26 = vpop.f32.mrb[45].mxu1 }
0x2094   :  { %v3859_v30 = vadd.f32 %v4160_v10, %v3858_v26 }
0x2095   :  { %v3868_v31 = vmul.f32 %v3864_v24, %v3864_v24 }
0x2096   :  { %v3867_v32 = vmul.f32 %v3859_v30, %v3859_v30 }
0x2097   :  { %v3870_v1 = vmul.f32 %v3868_v31, %v3864_v24 }
0x2098   :  { %v3869_v33 = vmul.f32 %v3867_v32, %v3859_v30 }
0x2099   :  { %v3872_v34 = vmul.f32 0.044715, %v3870_v1 }
0x209a   :  { %v3871_v35 = vmul.f32 0.044715, %v3869_v33 }
0x209b   :  { %v3874_v36 = vadd.f32 %v3872_v34, %v3864_v24 }
0x209c   :  { %v3873_v25 = vadd.f32 %v3871_v35, %v3859_v30 }
0x209d   :  { %v3876_v37 = vmul.f32 0.7978846, %v3874_v36 }
0x209e   :  { %v3875_v38 = vmul.f32 0.7978846, %v3873_v25 }
0x209f   :  { %4796 = vtanh.f32 %v3876_v37 }
0x20a0   :  { %4798 = vtanh.f32 %v3875_v38 }
0x20a9   :  { %v4797_v39 = vpop.eup %4796 }
0x20aa   :  { %v4799_v41 = vpop.eup %4798  ;;  %v3880_v42 = vadd.f32 1.0, %v4797_v39 }
0x20ab   :  { %v3879_v43 = vadd.f32 1.0, %v4799_v41 }
0x20ac   :  { %v3882_v45 = vmul.f32 0.5, %v3880_v42 }
0x20ad   :  { %v3881_v47 = vmul.f32 0.5, %v3879_v43 }
0x20ae   :  { %v3884_v15 = vmul.f32 %v3882_v45, %v3864_v24 }
0x20af   :  { %v3883_v48 = vmul.f32 %v3881_v47, %v3859_v30 }
0x20b1   :  { %4592 = vmatprep.mubr.msk.f32.mxu0 %vm2032_vm12, %v3883_v48 }
0x20b2   :  { %4593 = vmatmul.mubr.msk.f32.vlgmr.msra.gmra.mrb[34].mxu0 %vm2032_vm12, %v3884_v15 }
0x2185   :  { %v4594_v16 = vpop.f32.mrb[34].mxu0 }
0x2186   :  { %v3976_v50 = vadd.f32 %v4594_v16, %v5499_v40  ;;  %v3966_v52 = vpop.f32.mrb[35].mxu0 }
0x2187   :  { %v3975_v54 = vadd.f32 %v3966_v52, %v5501_v29 }
0x2188   :  { %v3986_v55 = vadd.f32 %v4174_v49, %v3976_v50 }
0x2189   :  { %v3985_v44 = vadd.f32 %v4174_v49, %v3975_v54 }
0x218a   :  { %v3992_v56 = vsel %vm272_vm7, %v3986_v55, 0.0 }
0x218b   :  { %3993 = vadd.xlane.f32.xlu0 %v3992_v56  ;;  %v3989_v57 = vsel %vm272_vm7, %v3985_v44, 0.0 }
0x218c   :  { %3990 = vadd.xlane.f32.xlu1 %v3989_v57 }
0x2218   :  { %v3994_v58 = vpop.xlane.xlu0 %3993 }
0x2219   :  { %v3996_v13 = vmul.f32 0.03125, %v3994_v58  ;;  %v3991_v59 = vpop.xlane.xlu1 %3990 }
0x221a   :  { %v3995_v61 = vmul.f32 0.03125, %v3991_v59 }
0x221b   :  { %v3998_v62 = vsub.f32 %v3986_v55, %v3996_v13 }
0x221c   :  { %v3997_v8 = vsub.f32 %v3985_v44, %v3995_v61 }
0x221d   :  { %v4000_v63 = vmul.f32 %v3998_v62, %v3998_v62 }
0x221e   :  { %v3999_v0 = vmul.f32 %v3997_v8, %v3997_v8 }
0x221f   :  { %v4004_v40 = vsel %vm272_vm7, %v4000_v63, 0.0 }
0x2220   :  { %4005 = vadd.xlane.f32.xlu0 %v4004_v40  ;;  %v4001_v29 = vsel %vm272_vm7, %v3999_v0, 0.0 }
0x2221   :  { %4002 = vadd.xlane.f32.xlu1 %v4001_v29 }
0x22ad   :  { %v4006_v2 = vpop.xlane.xlu0 %4005 }
0x22ae   :  { %v4008_v53 = vmul.f32 0.03125, %v4006_v2  ;;  %v4003_v4 = vpop.xlane.xlu1 %4002 }
0x22af   :  { %v4007_v27 = vmul.f32 0.03125, %v4003_v4 }
0x22b0   :  { %v4010_v28 = vadd.f32 1e-05, %v4008_v53 }
0x22b1   :  { %v4009_v5 = vadd.f32 1e-05, %v4007_v27 }
0x22b2   :  { %4800 = vrsqrt.f32 %v4010_v28 }
0x22b3   :  { %4802 = vrsqrt.f32 %v4009_v5 }
0x22bc   :  { %v4801_v6 = vpop.eup %4800 }
0x22bd   :  { %v4803_v11 = vpop.eup %4802  ;;  %v4014_v12 = vmul.f32 %v4801_v6, %v3998_v62 }
0x22be   :  { %v4013_v51 = vmul.f32 %v4803_v11, %v3997_v8 }
0x22bf   :  { %v4022_v17 = vmul.f32 %v4175_v7, %v4014_v12 }
0x22c0   :  { %v4021_v18 = vmul.f32 %v4175_v7, %v4013_v51 }
0x22c1   :  { %v4030_v19 = vadd.f32 %v4176_v14, %v4022_v17 }
0x22c2   :  { %v4029_v20 = vadd.f32 %v4176_v14, %v4021_v18 }
0x22c3   :  { %v4032_v9 = vsel %vm272_vm7, %v4030_v19, 0.0 }
0x22c4   :  { %v4031_v21 = vsel %vm272_vm7, %v4029_v20, 0.0 }
0x22c5   :  { %v4033_v60 = vadd.f32 %v4032_v9, %v4031_v21 }
0x22c7   :  { %4034 = vadd.xlane.f32.xlu1 %v4033_v60 }
0x2354   :  { %v4035_v46 = vpop.xlane.xlu1 %4034 }
0x2355   :  { %v4036_v3 = vrot.slane %v4035_v46, 4 }
0x2357   :  { %v4037_v23 = vadd.f32 %v4036_v3, %v4035_v46 }
0x2359   :  { %v4038_v10 = vrot.slane %v4037_v23, 2 }
0x235b   :  { %v4039_v22 = vadd.f32 %v4038_v10, %v4037_v23 }
0x235d   :  { %v4040_v24 = vrot.slane %v4039_v22, 1 }
0x235f   :  { %v4041_v26 = vadd.f32 %v4040_v24, %v4039_v22 }
0x2361   :  { %4689 = vpush %v4041_v26 }
0x2392   :  { %s4690_s16 = spop %4689 }
0x2393   :  { %4044 = sst [smem:[#allocation2]] %s4690_s16 }
0x2394   :  { %4813 = shalt.err (!%p4810_p2)
}
0x2395   :  { %s4834_s10 = smov [#allocation2]  }
0x2396   :  { %4052 = dma.smem_to_hbm %s4834_s10, 16, %s5607_s18, [#allocation3]  }
0x2397   :  { %4814 = dma.done.wait [#allocation3], 16  }
0x2398   :  { %4815 = vsyncadd [#allocation3], 4294967280 }
0x2399   :  { %4056 = sfence }
0x239a   :  { %4057 = vsyncpa [#allocation3], 1 }

</bundles_post_ra>
